<compile_context>
chip_gen: v7x
topology: tpu7x:2x2x1
jax: 0.10.0
libtpu: 0.0.40
codegen_flags: <defaults>
</compile_context>

<pallas_src>
import functools

import jax
import jax.numpy as jnp
from jax.experimental import pallas as pl
from jax.experimental.pallas import tpu as pltpu

VMEM = pl.BlockSpec(memory_space=pltpu.MemorySpace.VMEM)


def _ceil_to(x, m):
    return (x + m - 1) // m * m


# ------------------------------ Pallas kernels ------------------------------

def _conv1_bn_relu_pool_kernel(p_ref, w_ref, g_ref, b_ref, o_ref, *, inv_n):
    """conv1 (4 lane-dense matmuls) + BatchNorm2d (training stats) + ReLU + MaxPool2x2.

    p_ref: [4, 25, Mp]   im2col patches; leading dim = 2x2 pool-window quadrant,
                         25 = Cin*k*k, Mp = pad128(B*14*14) pooled positions (lanes).
                         Padding columns are zero -> contribute nothing to BN sums.
    w_ref: [8, 25]       conv1 weight, channels padded 6->8 (bias cancelled by BN).
    g_ref, b_ref: [8, 1] BatchNorm gamma / beta (padded).
    o_ref: [8, Mp]       pooled activations; channels on sublanes, positions on lanes.
    """
    w = w_ref[...]
    ys = [jnp.dot(w, p_ref[q], preferred_element_type=jnp.float32) for q in range(4)]
    s1 = sum(jnp.sum(y, axis=-1, keepdims=True) for y in ys)        # [8, 1]
    s2 = sum(jnp.sum(y * y, axis=-1, keepdims=True) for y in ys)
    mean = s1 * inv_n
    var = s2 * inv_n - mean * mean                                   # biased (PyTorch training mode)
    scale = g_ref[...] * jax.lax.rsqrt(var + 1e-5)
    shift = b_ref[...] - mean * scale
    zs = [jnp.maximum(y * scale + shift, 0.0) for y in ys]
    o_ref[...] = jnp.maximum(jnp.maximum(zs[0], zs[1]), jnp.maximum(zs[2], zs[3]))


def _conv2_bn_relu_pool_fc_kernel(p_ref, w2t_ref, g_ref, b_ref,
                                  w1h_ref, b1_ref, w2f_ref, b2f_ref,
                                  w3f_ref, b3f_ref, o_ref, *, inv_n, batch):
    """conv2 + BN + ReLU + MaxPool + Flatten + fc1/ReLU + fc2/ReLU + fc3/Tanh + L2norm.

    Batch lives on the sublane axis throughout; no loop over batch anywhere.

    p_ref:  [4, 25*B, 150] conv2 im2col patches; row = pooled_pos*B + b,
                           col = cin*25 + ki*5 + kj (pool quadrant on leading dim).
    w2t_ref: [150, 16]     conv2 weight transposed (bias cancelled by BN).
    g_ref, b_ref: [1, 16]  BatchNorm gamma / beta.
    w1h_ref: [25, 16, 120] fc1 weight regrouped per pooled position (PyTorch
                           flatten order (c, i, j) honoured by host-side permute).
    b1_ref: [1, 120]; w2f_ref: [120, 120]; b2f_ref: [1, 120]
    w3f_ref: [120, 30]; bf3_ref: [1, 30]
    o_ref:  [B, 30]        L2-normalized embeddings.
    """
    w2t = w2t_ref[...]
    ys = [jnp.dot(p_ref[q], w2t, preferred_element_type=jnp.float32)
          for q in range(4)]                                         # each [25*B, 16]
    s1 = sum(jnp.sum(y, axis=0, keepdims=True) for y in ys)          # [1, 16]
    s2 = sum(jnp.sum(y * y, axis=0, keepdims=True) for y in ys)
    mean = s1 * inv_n
    var = s2 * inv_n - mean * mean
    scale = g_ref[...] * jax.lax.rsqrt(var + 1e-5)
    shift = b_ref[...] - mean * scale
    zs = [jnp.maximum(y * scale + shift, 0.0) for y in ys]
    pooled = jnp.maximum(jnp.maximum(zs[0], zs[1]),
                         jnp.maximum(zs[2], zs[3]))                  # [25*B, 16]

    # fc1: h1[b, :] = sum_p pooled[p*B + b, :] @ w1h[p]   (25 matmuls, constant in B)
    h1 = sum(jnp.dot(pooled[p * batch:(p + 1) * batch, :], w1h_ref[p],
                     preferred_element_type=jnp.float32) for p in range(25))
    h1 = jnp.maximum(h1 + b1_ref[...], 0.0)                          # [B, 120]
    h2 = jnp.maximum(jnp.dot(h1, w2f_ref[...],
                             preferred_element_type=jnp.float32) + b2f_ref[...], 0.0)
    z = jnp.tanh(jnp.dot(h2, w3f_ref[...],
                         preferred_element_type=jnp.float32) + b3f_ref[...])   # [B, 30]
    ss = jnp.sum(z * z, axis=-1, keepdims=True)
    # F.normalize(p=2, dim=1): z / max(||z||, 1e-12) == z * rsqrt(max(||z||^2, 1e-24))
    o_ref[...] = z * jax.lax.rsqrt(jnp.maximum(ss, 1e-24))


# --------------------- XLA-side patch packing (tiny) ------------------------
# Mosaic has no cheap in-kernel strided-window gather, so the im2col + pool-window
# expansion is done here; the kernels see plain dense matmuls.

def _pack_conv1_patches(x, m_pad):
    # x: [B, 1, 32, 32] -> [4, 25, m_pad]; lane = b*196 + ip*14 + jp
    B = x.shape[0]
    xs = x[:, 0]                                                     # [B, 32, 32]
    taps = jnp.stack([xs[:, ki:ki + 28, kj:kj + 28]
                      for ki in range(5) for kj in range(5)], axis=0)  # [25, B, 28, 28]
    qs = []
    for a in range(2):
        for bq in range(2):
            qs.append(taps[:, :, a::2, bq::2].reshape(25, B * 196))  # [25, B*196]
    p = jnp.stack(qs, axis=0)                                        # [4, 25, B*196]
    if m_pad > B * 196:
        p = jnp.pad(p, ((0, 0), (0, 0), (0, m_pad - B * 196)))
    return p


def _pack_conv2_patches(a1):
    # a1: [6, B, 14, 14] -> [4, 25*B, 150]; row = (ip*5+jp)*B + b, col = cin*25 + ki*5+kj
    B = a1.shape[1]
    taps = jnp.stack([a1[:, :, ki:ki + 10, kj:kj + 10]
                      for ki in range(5) for kj in range(5)], axis=0)  # [25, 6, B, 10, 10]
    qs = []
    for a in range(2):
        for bq in range(2):
            sub = taps[:, :, :, a::2, bq::2]                         # [25, 6, B, 5, 5]
            sub = jnp.transpose(sub, (3, 4, 2, 1, 0))                # (ip, jp, b, cin, tap)
            qs.append(sub.reshape(25 * B, 150))
    return jnp.stack(qs, axis=0)                                     # [4, 25*B, 150]


# ------------------------------ Forward pass --------------------------------

def preprocess_params(params):
    """One-time weight re-layout, hoisted out of the per-step forward."""
    return {
        # conv biases exist in the PyTorch module but are mathematically cancelled
        # by the following BatchNorm's mean subtraction, so they are not used.
        "conv1_w": jnp.pad(params["conv1_w"].reshape(6, 25), ((0, 2), (0, 0))),   # [8, 25]
        "bn1_g": jnp.pad(params["bn1_g"], (0, 2), constant_values=1.0).reshape(8, 1),
        "bn1_b": jnp.pad(params["bn1_b"], (0, 2)).reshape(8, 1),
        "conv2_wT": params["conv2_w"].reshape(16, 150).T,                          # [150, 16]
        "bn2_g": params["bn2_g"].reshape(1, 16),
        "bn2_b": params["bn2_b"].reshape(1, 16),
        # fc1 [120, 400] with PyTorch flatten order (c, i, j):
        # w1h[p, c, o] = fc1_w[o, c*25 + p],  p = i*5 + j.
        "fc1_w": params["fc1_w"].reshape(120, 16, 25).transpose(2, 1, 0),          # [25, 16, 120]
        "fc1_b": params["fc1_b"].reshape(1, 120),
        "fc2_w": params["fc2_w"].T,                                                # [120, 120]
        "fc2_b": params["fc2_b"].reshape(1, 120),
        "fc3_w": params["fc3_w"].T,                                                # [120, 30]
        "fc3_b": params["fc3_b"].reshape(1, 30),
    }


def cnn_forward(prep, x):
    B = x.shape[0]
    m1 = B * 196
    m1p = _ceil_to(m1, 128)

    # ---- Stage 1: conv1 + BN1 + ReLU + pool1 -> [8, m1p] (lane-dense) ----
    p1 = _pack_conv1_patches(x, m1p)
    bytes1 = 4 * (p1.size + prep["conv1_w"].size + 16 + 8 * m1p)
    a1p = pl.pallas_call(
        functools.partial(_conv1_bn_relu_pool_kernel, inv_n=1.0 / (4.0 * m1)),
        out_shape=jax.ShapeDtypeStruct((8, m1p), jnp.float32),
        in_specs=[VMEM] * 4,
        out_specs=VMEM,
        compiler_params=pltpu.CompilerParams(
            vmem_limit_bytes=int(min(128 << 20, max(32 << 20, 2 * bytes1 + (2 << 20))))),
        cost_estimate=pl.CostEstimate(flops=int(2 * 4 * 8 * 25 * m1p + 12 * 8 * m1p),
                                      transcendentals=8,
                                      bytes_accessed=int(bytes1)),
    )(p1, prep["conv1_w"], prep["bn1_g"], prep["bn1_b"])
    a1 = a1p[:6, :m1].reshape(6, B, 14, 14)

    # ---- Stage 2: conv2 + BN2 + ReLU + pool2 + flatten + fc1/fc2/fc3 + tanh + L2 ----
    p2 = _pack_conv2_patches(a1)
    bytes2 = 4 * (p2.size + 150 * 16 + 32 + 25 * 16 * 120 + 120
                  + 120 * 120 + 120 + 120 * 30 + 30 + B * 30)
    flops2 = int(2 * 4 * 25 * B * 150 * 16 + 2 * 25 * B * 16 * 120
                 + 2 * B * 120 * 120 + 2 * B * 120 * 30 + 40 * B * 100 * 16)
    out = pl.pallas_call(
        functools.partial(_conv2_bn_relu_pool_fc_kernel,
                          inv_n=1.0 / (100.0 * B), batch=B),
        out_shape=jax.ShapeDtypeStruct((B, 30), jnp.float32),
        in_specs=[VMEM] * 10,
        out_specs=VMEM,
        compiler_params=pltpu.CompilerParams(
            vmem_limit_bytes=int(min(128 << 20, max(32 << 20, 2 * bytes2 + (2 << 20))))),
        cost_estimate=pl.CostEstimate(flops=flops2,
                                      transcendentals=int(16 + 31 * B),
                                      bytes_accessed=int(bytes2)),
    )(p2, prep["conv2_wT"], prep["bn2_g"], prep["bn2_b"],
      prep["fc1_w"], prep["fc1_b"], prep["fc2_w"], prep["fc2_b"],
      prep["fc3_w"], prep["fc3_b"])
    return out


def init_params(key):
    # Deterministic init mimicking PyTorch defaults (uniform(-1/sqrt(fan_in), ..)),
    # BatchNorm affine params init to gamma=1, beta=0.
    ks = jax.random.split(key, 10)

    def u(k, shape, fan_in):
        bound = 1.0 / jnp.sqrt(jnp.float32(fan_in))
        return jax.random.uniform(k, shape, jnp.float32, -bound, bound)

    return {
        "conv1_w": u(ks[0], (6, 1, 5, 5), 25),
        "conv1_b": u(ks[1], (6,), 25),     # unused: cancelled by BN mean subtraction
        "bn1_g": jnp.ones((6,), jnp.float32),
        "bn1_b": jnp.zeros((6,), jnp.float32),
        "conv2_w": u(ks[2], (16, 6, 5, 5), 150),
        "conv2_b": u(ks[3], (16,), 150),   # unused: cancelled by BN mean subtraction
        "bn2_g": jnp.ones((16,), jnp.float32),
        "bn2_b": jnp.zeros((16,), jnp.float32),
        "fc1_w": u(ks[4], (120, 400), 400),
        "fc1_b": u(ks[5], (120,), 400),
        "fc2_w": u(ks[6], (120, 120), 120),
        "fc2_b": u(ks[7], (120,), 120),
        "fc3_w": u(ks[8], (30, 120), 120),
        "fc3_b": u(ks[9], (30,), 120),
    }


if __name__ == "__main__":
    key = jax.random.PRNGKey(0)
    pkey, xkey = jax.random.split(key)
    params = init_params(pkey)
    prep = preprocess_params(params)                       # one-time weight re-layout
    x = jax.random.normal(xkey, (2, 1, 32, 32), jnp.float32)  # B=2, NCHW (32x32 forced by fc1=400)
    out = jax.jit(cnn_forward)(prep, x)
    out = jax.block_until_ready(out)
    assert out.shape == (2, 30), out.shape
    assert bool(jnp.all(jnp.isfinite(out)))
    # L2-normalized rows must have unit norm.
    norms = jnp.sqrt(jnp.sum(out * out, axis=1))
    assert bool(jnp.all(jnp.abs(norms - 1.0) < 1e-4)), norms
    print("KERNEL_OK")
</pallas_src>

<mosaic_0001>
module attributes {stable_mosaic.version = 11 : i64} {
  func.func @_conv1_bn_relu_pool_kernel(%arg0: memref<4x25x512xf32, #tpu.memory_space<vmem>>, %arg1: memref<8x25xf32, #tpu.memory_space<vmem>>, %arg2: memref<8x1xf32, #tpu.memory_space<vmem>>, %arg3: memref<8x1xf32, #tpu.memory_space<vmem>>, %arg4: memref<8x512xf32, #tpu.memory_space<vmem>>) attributes {dimension_semantics = [], scalar_prefetch = 0 : i64, scratch_operands = 0 : i64, tpu.core_type = #tpu.core_type<tc>} {
    %c0 = arith.constant 0 : index
    %c0_0 = arith.constant 0 : index
    %0 = vector.load %arg1[%c0, %c0_0] : memref<8x25xf32, #tpu.memory_space<vmem>>, vector<8x25xf32>
    %c0_1 = arith.constant 0 : index
    %c0_2 = arith.constant 0 : index
    %c0_3 = arith.constant 0 : index
    %1 = vector.load %arg0[%c0_1, %c0_2, %c0_3] : memref<4x25x512xf32, #tpu.memory_space<vmem>>, vector<1x25x512xf32>
    %2 = vector.shape_cast %1 : vector<1x25x512xf32> to vector<25x512xf32>
    %cst = arith.constant dense<0.000000e+00> : vector<8x512xf32>
    %3 = tpu.matmul %0, %2, %cst {dimension_numbers = #tpu.dot_dimension_numbers<[1], [0], [0], [1], [0, 0, 1, 1], [], []>} : vector<8x25xf32>, vector<25x512xf32>, vector<8x512xf32> -> vector<8x512xf32>
    %c1 = arith.constant 1 : index
    %c0_4 = arith.constant 0 : index
    %c0_5 = arith.constant 0 : index
    %4 = vector.load %arg0[%c1, %c0_4, %c0_5] : memref<4x25x512xf32, #tpu.memory_space<vmem>>, vector<1x25x512xf32>
    %5 = vector.shape_cast %4 : vector<1x25x512xf32> to vector<25x512xf32>
    %cst_6 = arith.constant dense<0.000000e+00> : vector<8x512xf32>
    %6 = tpu.matmul %0, %5, %cst_6 {dimension_numbers = #tpu.dot_dimension_numbers<[1], [0], [0], [1], [0, 0, 1, 1], [], []>} : vector<8x25xf32>, vector<25x512xf32>, vector<8x512xf32> -> vector<8x512xf32>
    %c2 = arith.constant 2 : index
    %c0_7 = arith.constant 0 : index
    %c0_8 = arith.constant 0 : index
    %7 = vector.load %arg0[%c2, %c0_7, %c0_8] : memref<4x25x512xf32, #tpu.memory_space<vmem>>, vector<1x25x512xf32>
    %8 = vector.shape_cast %7 : vector<1x25x512xf32> to vector<25x512xf32>
    %cst_9 = arith.constant dense<0.000000e+00> : vector<8x512xf32>
    %9 = tpu.matmul %0, %8, %cst_9 {dimension_numbers = #tpu.dot_dimension_numbers<[1], [0], [0], [1], [0, 0, 1, 1], [], []>} : vector<8x25xf32>, vector<25x512xf32>, vector<8x512xf32> -> vector<8x512xf32>
    %c3 = arith.constant 3 : index
    %c0_10 = arith.constant 0 : index
    %c0_11 = arith.constant 0 : index
    %10 = vector.load %arg0[%c3, %c0_10, %c0_11] : memref<4x25x512xf32, #tpu.memory_space<vmem>>, vector<1x25x512xf32>
    %11 = vector.shape_cast %10 : vector<1x25x512xf32> to vector<25x512xf32>
    %cst_12 = arith.constant dense<0.000000e+00> : vector<8x512xf32>
    %12 = tpu.matmul %0, %11, %cst_12 {dimension_numbers = #tpu.dot_dimension_numbers<[1], [0], [0], [1], [0, 0, 1, 1], [], []>} : vector<8x25xf32>, vector<25x512xf32>, vector<8x512xf32> -> vector<8x512xf32>
    %cst_13 = arith.constant dense<0.000000e+00> : vector<8xf32>
    %13 = vector.multi_reduction <add>, %3, %cst_13 [1] : vector<8x512xf32> to vector<8xf32>
    %14 = vector.shape_cast %13 : vector<8xf32> to vector<8x1xf32>
    %cst_14 = arith.constant 0.000000e+00 : f32
    %15 = vector.broadcast %cst_14 : f32 to vector<8x1xf32>
    %16 = arith.addf %15, %14 : vector<8x1xf32>
    %cst_15 = arith.constant dense<0.000000e+00> : vector<8xf32>
    %17 = vector.multi_reduction <add>, %6, %cst_15 [1] : vector<8x512xf32> to vector<8xf32>
    %18 = vector.shape_cast %17 : vector<8xf32> to vector<8x1xf32>
    %19 = arith.addf %16, %18 : vector<8x1xf32>
    %cst_16 = arith.constant dense<0.000000e+00> : vector<8xf32>
    %20 = vector.multi_reduction <add>, %9, %cst_16 [1] : vector<8x512xf32> to vector<8xf32>
    %21 = vector.shape_cast %20 : vector<8xf32> to vector<8x1xf32>
    %22 = arith.addf %19, %21 : vector<8x1xf32>
    %cst_17 = arith.constant dense<0.000000e+00> : vector<8xf32>
    %23 = vector.multi_reduction <add>, %12, %cst_17 [1] : vector<8x512xf32> to vector<8xf32>
    %24 = vector.shape_cast %23 : vector<8xf32> to vector<8x1xf32>
    %25 = arith.addf %22, %24 : vector<8x1xf32>
    %26 = arith.mulf %3, %3 : vector<8x512xf32>
    %cst_18 = arith.constant dense<0.000000e+00> : vector<8xf32>
    %27 = vector.multi_reduction <add>, %26, %cst_18 [1] : vector<8x512xf32> to vector<8xf32>
    %28 = vector.shape_cast %27 : vector<8xf32> to vector<8x1xf32>
    %cst_19 = arith.constant 0.000000e+00 : f32
    %29 = vector.broadcast %cst_19 : f32 to vector<8x1xf32>
    %30 = arith.addf %29, %28 : vector<8x1xf32>
    %31 = arith.mulf %6, %6 : vector<8x512xf32>
    %cst_20 = arith.constant dense<0.000000e+00> : vector<8xf32>
    %32 = vector.multi_reduction <add>, %31, %cst_20 [1] : vector<8x512xf32> to vector<8xf32>
    %33 = vector.shape_cast %32 : vector<8xf32> to vector<8x1xf32>
    %34 = arith.addf %30, %33 : vector<8x1xf32>
    %35 = arith.mulf %9, %9 : vector<8x512xf32>
    %cst_21 = arith.constant dense<0.000000e+00> : vector<8xf32>
    %36 = vector.multi_reduction <add>, %35, %cst_21 [1] : vector<8x512xf32> to vector<8xf32>
    %37 = vector.shape_cast %36 : vector<8xf32> to vector<8x1xf32>
    %38 = arith.addf %34, %37 : vector<8x1xf32>
    %39 = arith.mulf %12, %12 : vector<8x512xf32>
    %cst_22 = arith.constant dense<0.000000e+00> : vector<8xf32>
    %40 = vector.multi_reduction <add>, %39, %cst_22 [1] : vector<8x512xf32> to vector<8xf32>
    %41 = vector.shape_cast %40 : vector<8xf32> to vector<8x1xf32>
    %42 = arith.addf %38, %41 : vector<8x1xf32>
    %cst_23 = arith.constant 6.37755089E-4 : f32
    %43 = vector.broadcast %cst_23 : f32 to vector<8x1xf32>
    %44 = arith.mulf %25, %43 : vector<8x1xf32>
    %cst_24 = arith.constant 6.37755089E-4 : f32
    %45 = vector.broadcast %cst_24 : f32 to vector<8x1xf32>
    %46 = arith.mulf %42, %45 : vector<8x1xf32>
    %47 = arith.mulf %44, %44 : vector<8x1xf32>
    %48 = arith.subf %46, %47 : vector<8x1xf32>
    %c0_25 = arith.constant 0 : index
    %c0_26 = arith.constant 0 : index
    %49 = vector.load %arg2[%c0_25, %c0_26] : memref<8x1xf32, #tpu.memory_space<vmem>>, vector<8x1xf32>
    %cst_27 = arith.constant 9.99999974E-6 : f32
    %50 = vector.broadcast %cst_27 : f32 to vector<8x1xf32>
    %51 = arith.addf %48, %50 : vector<8x1xf32>
    %52 = math.rsqrt %51 : vector<8x1xf32>
    %53 = arith.mulf %49, %52 : vector<8x1xf32>
    %c0_28 = arith.constant 0 : index
    %c0_29 = arith.constant 0 : index
    %54 = vector.load %arg3[%c0_28, %c0_29] : memref<8x1xf32, #tpu.memory_space<vmem>>, vector<8x1xf32>
    %55 = arith.mulf %44, %53 : vector<8x1xf32>
    %56 = arith.subf %54, %55 : vector<8x1xf32>
    %57 = vector.broadcast %53 : vector<8x1xf32> to vector<8x512xf32>
    %58 = arith.mulf %3, %57 : vector<8x512xf32>
    %59 = vector.broadcast %56 : vector<8x1xf32> to vector<8x512xf32>
    %60 = arith.addf %58, %59 : vector<8x512xf32>
    %cst_30 = arith.constant 0.000000e+00 : f32
    %61 = vector.broadcast %cst_30 : f32 to vector<8x512xf32>
    %62 = arith.maximumf %60, %61 : vector<8x512xf32>
    %63 = vector.broadcast %53 : vector<8x1xf32> to vector<8x512xf32>
    %64 = arith.mulf %6, %63 : vector<8x512xf32>
    %65 = vector.broadcast %56 : vector<8x1xf32> to vector<8x512xf32>
    %66 = arith.addf %64, %65 : vector<8x512xf32>
    %cst_31 = arith.constant 0.000000e+00 : f32
    %67 = vector.broadcast %cst_31 : f32 to vector<8x512xf32>
    %68 = arith.maximumf %66, %67 : vector<8x512xf32>
    %69 = vector.broadcast %53 : vector<8x1xf32> to vector<8x512xf32>
    %70 = arith.mulf %9, %69 : vector<8x512xf32>
    %71 = vector.broadcast %56 : vector<8x1xf32> to vector<8x512xf32>
    %72 = arith.addf %70, %71 : vector<8x512xf32>
    %cst_32 = arith.constant 0.000000e+00 : f32
    %73 = vector.broadcast %cst_32 : f32 to vector<8x512xf32>
    %74 = arith.maximumf %72, %73 : vector<8x512xf32>
    %75 = vector.broadcast %53 : vector<8x1xf32> to vector<8x512xf32>
    %76 = arith.mulf %12, %75 : vector<8x512xf32>
    %77 = vector.broadcast %56 : vector<8x1xf32> to vector<8x512xf32>
    %78 = arith.addf %76, %77 : vector<8x512xf32>
    %cst_33 = arith.constant 0.000000e+00 : f32
    %79 = vector.broadcast %cst_33 : f32 to vector<8x512xf32>
    %80 = arith.maximumf %78, %79 : vector<8x512xf32>
    %81 = arith.maximumf %62, %68 : vector<8x512xf32>
    %82 = arith.maximumf %74, %80 : vector<8x512xf32>
    %83 = arith.maximumf %81, %82 : vector<8x512xf32>
    %c0_34 = arith.constant 0 : index
    %c0_35 = arith.constant 0 : index
    %84 = vector.load %arg4[%c0_34, %c0_35] : memref<8x512xf32, #tpu.memory_space<vmem>>, vector<8x512xf32>
    tpu.vector_store %arg4[%c0_34, %c0_35], %83 {strides = array<i32>} : memref<8x512xf32, #tpu.memory_space<vmem>>, vector<8x512xf32>,
    return
  }
}

module attributes {stable_mosaic.version = 11 : i64} {
  func.func @_conv2_bn_relu_pool_fc_kernel(%arg0: memref<4x50x150xf32, #tpu.memory_space<vmem>>, %arg1: memref<150x16xf32, #tpu.memory_space<vmem>>, %arg2: memref<1x16xf32, #tpu.memory_space<vmem>>, %arg3: memref<1x16xf32, #tpu.memory_space<vmem>>, %arg4: memref<25x16x120xf32, #tpu.memory_space<vmem>>, %arg5: memref<1x120xf32, #tpu.memory_space<vmem>>, %arg6: memref<120x120xf32, #tpu.memory_space<vmem>>, %arg7: memref<1x120xf32, #tpu.memory_space<vmem>>, %arg8: memref<120x30xf32, #tpu.memory_space<vmem>>, %arg9: memref<1x30xf32, #tpu.memory_space<vmem>>, %arg10: memref<2x30xf32, #tpu.memory_space<vmem>>) attributes {dimension_semantics = [], scalar_prefetch = 0 : i64, scratch_operands = 0 : i64, tpu.core_type = #tpu.core_type<tc>} {
    %c0 = arith.constant 0 : index
    %c0_0 = arith.constant 0 : index
    %0 = vector.load %arg1[%c0, %c0_0] : memref<150x16xf32, #tpu.memory_space<vmem>>, vector<150x16xf32>
    %c0_1 = arith.constant 0 : index
    %c0_2 = arith.constant 0 : index
    %c0_3 = arith.constant 0 : index
    %1 = vector.load %arg0[%c0_1, %c0_2, %c0_3] : memref<4x50x150xf32, #tpu.memory_space<vmem>>, vector<1x50x150xf32>
    %2 = vector.shape_cast %1 : vector<1x50x150xf32> to vector<50x150xf32>
    %cst = arith.constant dense<0.000000e+00> : vector<50x16xf32>
    %3 = tpu.matmul %2, %0, %cst {dimension_numbers = #tpu.dot_dimension_numbers<[1], [0], [0], [1], [0, 0, 1, 1], [], []>} : vector<50x150xf32>, vector<150x16xf32>, vector<50x16xf32> -> vector<50x16xf32>
    %c1 = arith.constant 1 : index
    %c0_4 = arith.constant 0 : index
    %c0_5 = arith.constant 0 : index
    %4 = vector.load %arg0[%c1, %c0_4, %c0_5] : memref<4x50x150xf32, #tpu.memory_space<vmem>>, vector<1x50x150xf32>
    %5 = vector.shape_cast %4 : vector<1x50x150xf32> to vector<50x150xf32>
    %cst_6 = arith.constant dense<0.000000e+00> : vector<50x16xf32>
    %6 = tpu.matmul %5, %0, %cst_6 {dimension_numbers = #tpu.dot_dimension_numbers<[1], [0], [0], [1], [0, 0, 1, 1], [], []>} : vector<50x150xf32>, vector<150x16xf32>, vector<50x16xf32> -> vector<50x16xf32>
    %c2 = arith.constant 2 : index
    %c0_7 = arith.constant 0 : index
    %c0_8 = arith.constant 0 : index
    %7 = vector.load %arg0[%c2, %c0_7, %c0_8] : memref<4x50x150xf32, #tpu.memory_space<vmem>>, vector<1x50x150xf32>
    %8 = vector.shape_cast %7 : vector<1x50x150xf32> to vector<50x150xf32>
    %cst_9 = arith.constant dense<0.000000e+00> : vector<50x16xf32>
    %9 = tpu.matmul %8, %0, %cst_9 {dimension_numbers = #tpu.dot_dimension_numbers<[1], [0], [0], [1], [0, 0, 1, 1], [], []>} : vector<50x150xf32>, vector<150x16xf32>, vector<50x16xf32> -> vector<50x16xf32>
    %c3 = arith.constant 3 : index
    %c0_10 = arith.constant 0 : index
    %c0_11 = arith.constant 0 : index
    %10 = vector.load %arg0[%c3, %c0_10, %c0_11] : memref<4x50x150xf32, #tpu.memory_space<vmem>>, vector<1x50x150xf32>
    %11 = vector.shape_cast %10 : vector<1x50x150xf32> to vector<50x150xf32>
    %cst_12 = arith.constant dense<0.000000e+00> : vector<50x16xf32>
    %12 = tpu.matmul %11, %0, %cst_12 {dimension_numbers = #tpu.dot_dimension_numbers<[1], [0], [0], [1], [0, 0, 1, 1], [], []>} : vector<50x150xf32>, vector<150x16xf32>, vector<50x16xf32> -> vector<50x16xf32>
    %cst_13 = arith.constant dense<0.000000e+00> : vector<16xf32>
    %13 = vector.multi_reduction <add>, %3, %cst_13 [0] : vector<50x16xf32> to vector<16xf32>
    %14 = vector.shape_cast %13 : vector<16xf32> to vector<1x16xf32>
    %cst_14 = arith.constant 0.000000e+00 : f32
    %15 = vector.broadcast %cst_14 : f32 to vector<1x16xf32>
    %16 = arith.addf %15, %14 : vector<1x16xf32>
    %cst_15 = arith.constant dense<0.000000e+00> : vector<16xf32>
    %17 = vector.multi_reduction <add>, %6, %cst_15 [0] : vector<50x16xf32> to vector<16xf32>
    %18 = vector.shape_cast %17 : vector<16xf32> to vector<1x16xf32>
    %19 = arith.addf %16, %18 : vector<1x16xf32>
    %cst_16 = arith.constant dense<0.000000e+00> : vector<16xf32>
    %20 = vector.multi_reduction <add>, %9, %cst_16 [0] : vector<50x16xf32> to vector<16xf32>
    %21 = vector.shape_cast %20 : vector<16xf32> to vector<1x16xf32>
    %22 = arith.addf %19, %21 : vector<1x16xf32>
    %cst_17 = arith.constant dense<0.000000e+00> : vector<16xf32>
    %23 = vector.multi_reduction <add>, %12, %cst_17 [0] : vector<50x16xf32> to vector<16xf32>
    %24 = vector.shape_cast %23 : vector<16xf32> to vector<1x16xf32>
    %25 = arith.addf %22, %24 : vector<1x16xf32>
    %26 = arith.mulf %3, %3 : vector<50x16xf32>
    %cst_18 = arith.constant dense<0.000000e+00> : vector<16xf32>
    %27 = vector.multi_reduction <add>, %26, %cst_18 [0] : vector<50x16xf32> to vector<16xf32>
    %28 = vector.shape_cast %27 : vector<16xf32> to vector<1x16xf32>
    %cst_19 = arith.constant 0.000000e+00 : f32
    %29 = vector.broadcast %cst_19 : f32 to vector<1x16xf32>
    %30 = arith.addf %29, %28 : vector<1x16xf32>
    %31 = arith.mulf %6, %6 : vector<50x16xf32>
    %cst_20 = arith.constant dense<0.000000e+00> : vector<16xf32>
    %32 = vector.multi_reduction <add>, %31, %cst_20 [0] : vector<50x16xf32> to vector<16xf32>
    %33 = vector.shape_cast %32 : vector<16xf32> to vector<1x16xf32>
    %34 = arith.addf %30, %33 : vector<1x16xf32>
    %35 = arith.mulf %9, %9 : vector<50x16xf32>
    %cst_21 = arith.constant dense<0.000000e+00> : vector<16xf32>
    %36 = vector.multi_reduction <add>, %35, %cst_21 [0] : vector<50x16xf32> to vector<16xf32>
    %37 = vector.shape_cast %36 : vector<16xf32> to vector<1x16xf32>
    %38 = arith.addf %34, %37 : vector<1x16xf32>
    %39 = arith.mulf %12, %12 : vector<50x16xf32>
    %cst_22 = arith.constant dense<0.000000e+00> : vector<16xf32>
    %40 = vector.multi_reduction <add>, %39, %cst_22 [0] : vector<50x16xf32> to vector<16xf32>
    %41 = vector.shape_cast %40 : vector<16xf32> to vector<1x16xf32>
    %42 = arith.addf %38, %41 : vector<1x16xf32>
    %cst_23 = arith.constant 5.000000e-03 : f32
    %43 = vector.broadcast %cst_23 : f32 to vector<1x16xf32>
    %44 = arith.mulf %25, %43 : vector<1x16xf32>
    %cst_24 = arith.constant 5.000000e-03 : f32
    %45 = vector.broadcast %cst_24 : f32 to vector<1x16xf32>
    %46 = arith.mulf %42, %45 : vector<1x16xf32>
    %47 = arith.mulf %44, %44 : vector<1x16xf32>
    %48 = arith.subf %46, %47 : vector<1x16xf32>
    %c0_25 = arith.constant 0 : index
    %c0_26 = arith.constant 0 : index
    %49 = vector.load %arg2[%c0_25, %c0_26] : memref<1x16xf32, #tpu.memory_space<vmem>>, vector<1x16xf32>
    %cst_27 = arith.constant 9.99999974E-6 : f32
    %50 = vector.broadcast %cst_27 : f32 to vector<1x16xf32>
    %51 = arith.addf %48, %50 : vector<1x16xf32>
    %52 = math.rsqrt %51 : vector<1x16xf32>
    %53 = arith.mulf %49, %52 : vector<1x16xf32>
    %c0_28 = arith.constant 0 : index
    %c0_29 = arith.constant 0 : index
    %54 = vector.load %arg3[%c0_28, %c0_29] : memref<1x16xf32, #tpu.memory_space<vmem>>, vector<1x16xf32>
    %55 = arith.mulf %44, %53 : vector<1x16xf32>
    %56 = arith.subf %54, %55 : vector<1x16xf32>
    %57 = vector.broadcast %53 : vector<1x16xf32> to vector<50x16xf32>
    %58 = arith.mulf %3, %57 : vector<50x16xf32>
    %59 = vector.broadcast %56 : vector<1x16xf32> to vector<50x16xf32>
    %60 = arith.addf %58, %59 : vector<50x16xf32>
    %cst_30 = arith.constant 0.000000e+00 : f32
    %61 = vector.broadcast %cst_30 : f32 to vector<50x16xf32>
    %62 = arith.maximumf %60, %61 : vector<50x16xf32>
    %63 = vector.broadcast %53 : vector<1x16xf32> to vector<50x16xf32>
    %64 = arith.mulf %6, %63 : vector<50x16xf32>
    %65 = vector.broadcast %56 : vector<1x16xf32> to vector<50x16xf32>
    %66 = arith.addf %64, %65 : vector<50x16xf32>
    %cst_31 = arith.constant 0.000000e+00 : f32
    %67 = vector.broadcast %cst_31 : f32 to vector<50x16xf32>
    %68 = arith.maximumf %66, %67 : vector<50x16xf32>
    %69 = vector.broadcast %53 : vector<1x16xf32> to vector<50x16xf32>
    %70 = arith.mulf %9, %69 : vector<50x16xf32>
    %71 = vector.broadcast %56 : vector<1x16xf32> to vector<50x16xf32>
    %72 = arith.addf %70, %71 : vector<50x16xf32>
    %cst_32 = arith.constant 0.000000e+00 : f32
    %73 = vector.broadcast %cst_32 : f32 to vector<50x16xf32>
    %74 = arith.maximumf %72, %73 : vector<50x16xf32>
    %75 = vector.broadcast %53 : vector<1x16xf32> to vector<50x16xf32>
    %76 = arith.mulf %12, %75 : vector<50x16xf32>
    %77 = vector.broadcast %56 : vector<1x16xf32> to vector<50x16xf32>
    %78 = arith.addf %76, %77 : vector<50x16xf32>
    %cst_33 = arith.constant 0.000000e+00 : f32
    %79 = vector.broadcast %cst_33 : f32 to vector<50x16xf32>
    %80 = arith.maximumf %78, %79 : vector<50x16xf32>
    %81 = arith.maximumf %62, %68 : vector<50x16xf32>
    %82 = arith.maximumf %74, %80 : vector<50x16xf32>
    %83 = arith.maximumf %81, %82 : vector<50x16xf32>
    %84 = vector.extract_strided_slice %83 {offsets = [0, 0], sizes = [2, 16], strides = [1, 1]} : vector<50x16xf32> to vector<2x16xf32>
    %c0_34 = arith.constant 0 : index
    %c0_35 = arith.constant 0 : index
    %c0_36 = arith.constant 0 : index
    %85 = vector.load %arg4[%c0_34, %c0_35, %c0_36] : memref<25x16x120xf32, #tpu.memory_space<vmem>>, vector<1x16x120xf32>
    %86 = vector.shape_cast %85 : vector<1x16x120xf32> to vector<16x120xf32>
    %cst_37 = arith.constant dense<0.000000e+00> : vector<2x120xf32>
    %87 = tpu.matmul %84, %86, %cst_37 {dimension_numbers = #tpu.dot_dimension_numbers<[1], [0], [0], [1], [0, 0, 1, 1], [], []>} : vector<2x16xf32>, vector<16x120xf32>, vector<2x120xf32> -> vector<2x120xf32>
    %cst_38 = arith.constant 0.000000e+00 : f32
    %88 = vector.broadcast %cst_38 : f32 to vector<2x120xf32>
    %89 = arith.addf %88, %87 : vector<2x120xf32>
    %90 = vector.extract_strided_slice %83 {offsets = [2, 0], sizes = [2, 16], strides = [1, 1]} : vector<50x16xf32> to vector<2x16xf32>
    %c1_39 = arith.constant 1 : index
    %c0_40 = arith.constant 0 : index
    %c0_41 = arith.constant 0 : index
    %91 = vector.load %arg4[%c1_39, %c0_40, %c0_41] : memref<25x16x120xf32, #tpu.memory_space<vmem>>, vector<1x16x120xf32>
    %92 = vector.shape_cast %91 : vector<1x16x120xf32> to vector<16x120xf32>
    %cst_42 = arith.constant dense<0.000000e+00> : vector<2x120xf32>
    %93 = tpu.matmul %90, %92, %cst_42 {dimension_numbers = #tpu.dot_dimension_numbers<[1], [0], [0], [1], [0, 0, 1, 1], [], []>} : vector<2x16xf32>, vector<16x120xf32>, vector<2x120xf32> -> vector<2x120xf32>
    %94 = arith.addf %89, %93 : vector<2x120xf32>
    %95 = vector.extract_strided_slice %83 {offsets = [4, 0], sizes = [2, 16], strides = [1, 1]} : vector<50x16xf32> to vector<2x16xf32>
    %c2_43 = arith.constant 2 : index
    %c0_44 = arith.constant 0 : index
    %c0_45 = arith.constant 0 : index
    %96 = vector.load %arg4[%c2_43, %c0_44, %c0_45] : memref<25x16x120xf32, #tpu.memory_space<vmem>>, vector<1x16x120xf32>
    %97 = vector.shape_cast %96 : vector<1x16x120xf32> to vector<16x120xf32>
    %cst_46 = arith.constant dense<0.000000e+00> : vector<2x120xf32>
    %98 = tpu.matmul %95, %97, %cst_46 {dimension_numbers = #tpu.dot_dimension_numbers<[1], [0], [0], [1], [0, 0, 1, 1], [], []>} : vector<2x16xf32>, vector<16x120xf32>, vector<2x120xf32> -> vector<2x120xf32>
    %99 = arith.addf %94, %98 : vector<2x120xf32>
    %100 = vector.extract_strided_slice %83 {offsets = [6, 0], sizes = [2, 16], strides = [1, 1]} : vector<50x16xf32> to vector<2x16xf32>
    %c3_47 = arith.constant 3 : index
    %c0_48 = arith.constant 0 : index
    %c0_49 = arith.constant 0 : index
    %101 = vector.load %arg4[%c3_47, %c0_48, %c0_49] : memref<25x16x120xf32, #tpu.memory_space<vmem>>, vector<1x16x120xf32>
    %102 = vector.shape_cast %101 : vector<1x16x120xf32> to vector<16x120xf32>
    %cst_50 = arith.constant dense<0.000000e+00> : vector<2x120xf32>
    %103 = tpu.matmul %100, %102, %cst_50 {dimension_numbers = #tpu.dot_dimension_numbers<[1], [0], [0], [1], [0, 0, 1, 1], [], []>} : vector<2x16xf32>, vector<16x120xf32>, vector<2x120xf32> -> vector<2x120xf32>
    %104 = arith.addf %99, %103 : vector<2x120xf32>
    %105 = vector.extract_strided_slice %83 {offsets = [8, 0], sizes = [2, 16], strides = [1, 1]} : vector<50x16xf32> to vector<2x16xf32>
    %c4 = arith.constant 4 : index
    %c0_51 = arith.constant 0 : index
    %c0_52 = arith.constant 0 : index
    %106 = vector.load %arg4[%c4, %c0_51, %c0_52] : memref<25x16x120xf32, #tpu.memory_space<vmem>>, vector<1x16x120xf32>
    %107 = vector.shape_cast %106 : vector<1x16x120xf32> to vector<16x120xf32>
    %cst_53 = arith.constant dense<0.000000e+00> : vector<2x120xf32>
    %108 = tpu.matmul %105, %107, %cst_53 {dimension_numbers = #tpu.dot_dimension_numbers<[1], [0], [0], [1], [0, 0, 1, 1], [], []>} : vector<2x16xf32>, vector<16x120xf32>, vector<2x120xf32> -> vector<2x120xf32>
    %109 = arith.addf %104, %108 : vector<2x120xf32>
    %110 = vector.extract_strided_slice %83 {offsets = [10, 0], sizes = [2, 16], strides = [1, 1]} : vector<50x16xf32> to vector<2x16xf32>
    %c5 = arith.constant 5 : index
    %c0_54 = arith.constant 0 : index
    %c0_55 = arith.constant 0 : index
    %111 = vector.load %arg4[%c5, %c0_54, %c0_55] : memref<25x16x120xf32, #tpu.memory_space<vmem>>, vector<1x16x120xf32>
    %112 = vector.shape_cast %111 : vector<1x16x120xf32> to vector<16x120xf32>
    %cst_56 = arith.constant dense<0.000000e+00> : vector<2x120xf32>
    %113 = tpu.matmul %110, %112, %cst_56 {dimension_numbers = #tpu.dot_dimension_numbers<[1], [0], [0], [1], [0, 0, 1, 1], [], []>} : vector<2x16xf32>, vector<16x120xf32>, vector<2x120xf32> -> vector<2x120xf32>
    %114 = arith.addf %109, %113 : vector<2x120xf32>
    %115 = vector.extract_strided_slice %83 {offsets = [12, 0], sizes = [2, 16], strides = [1, 1]} : vector<50x16xf32> to vector<2x16xf32>
    %c6 = arith.constant 6 : index
    %c0_57 = arith.constant 0 : index
    %c0_58 = arith.constant 0 : index
    %116 = vector.load %arg4[%c6, %c0_57, %c0_58] : memref<25x16x120xf32, #tpu.memory_space<vmem>>, vector<1x16x120xf32>
    %117 = vector.shape_cast %116 : vector<1x16x120xf32> to vector<16x120xf32>
    %cst_59 = arith.constant dense<0.000000e+00> : vector<2x120xf32>
    %118 = tpu.matmul %115, %117, %cst_59 {dimension_numbers = #tpu.dot_dimension_numbers<[1], [0], [0], [1], [0, 0, 1, 1], [], []>} : vector<2x16xf32>, vector<16x120xf32>, vector<2x120xf32> -> vector<2x120xf32>
    %119 = arith.addf %114, %118 : vector<2x120xf32>
    %120 = vector.extract_strided_slice %83 {offsets = [14, 0], sizes = [2, 16], strides = [1, 1]} : vector<50x16xf32> to vector<2x16xf32>
    %c7 = arith.constant 7 : index
    %c0_60 = arith.constant 0 : index
    %c0_61 = arith.constant 0 : index
    %121 = vector.load %arg4[%c7, %c0_60, %c0_61] : memref<25x16x120xf32, #tpu.memory_space<vmem>>, vector<1x16x120xf32>
    %122 = vector.shape_cast %121 : vector<1x16x120xf32> to vector<16x120xf32>
    %cst_62 = arith.constant dense<0.000000e+00> : vector<2x120xf32>
    %123 = tpu.matmul %120, %122, %cst_62 {dimension_numbers = #tpu.dot_dimension_numbers<[1], [0], [0], [1], [0, 0, 1, 1], [], []>} : vector<2x16xf32>, vector<16x120xf32>, vector<2x120xf32> -> vector<2x120xf32>
    %124 = arith.addf %119, %123 : vector<2x120xf32>
    %125 = vector.extract_strided_slice %83 {offsets = [16, 0], sizes = [2, 16], strides = [1, 1]} : vector<50x16xf32> to vector<2x16xf32>
    %c8 = arith.constant 8 : index
    %c0_63 = arith.constant 0 : index
    %c0_64 = arith.constant 0 : index
    %126 = vector.load %arg4[%c8, %c0_63, %c0_64] : memref<25x16x120xf32, #tpu.memory_space<vmem>>, vector<1x16x120xf32>
    %127 = vector.shape_cast %126 : vector<1x16x120xf32> to vector<16x120xf32>
    %cst_65 = arith.constant dense<0.000000e+00> : vector<2x120xf32>
    %128 = tpu.matmul %125, %127, %cst_65 {dimension_numbers = #tpu.dot_dimension_numbers<[1], [0], [0], [1], [0, 0, 1, 1], [], []>} : vector<2x16xf32>, vector<16x120xf32>, vector<2x120xf32> -> vector<2x120xf32>
    %129 = arith.addf %124, %128 : vector<2x120xf32>
    %130 = vector.extract_strided_slice %83 {offsets = [18, 0], sizes = [2, 16], strides = [1, 1]} : vector<50x16xf32> to vector<2x16xf32>
    %c9 = arith.constant 9 : index
    %c0_66 = arith.constant 0 : index
    %c0_67 = arith.constant 0 : index
    %131 = vector.load %arg4[%c9, %c0_66, %c0_67] : memref<25x16x120xf32, #tpu.memory_space<vmem>>, vector<1x16x120xf32>
    %132 = vector.shape_cast %131 : vector<1x16x120xf32> to vector<16x120xf32>
    %cst_68 = arith.constant dense<0.000000e+00> : vector<2x120xf32>
    %133 = tpu.matmul %130, %132, %cst_68 {dimension_numbers = #tpu.dot_dimension_numbers<[1], [0], [0], [1], [0, 0, 1, 1], [], []>} : vector<2x16xf32>, vector<16x120xf32>, vector<2x120xf32> -> vector<2x120xf32>
    %134 = arith.addf %129, %133 : vector<2x120xf32>
    %135 = vector.extract_strided_slice %83 {offsets = [20, 0], sizes = [2, 16], strides = [1, 1]} : vector<50x16xf32> to vector<2x16xf32>
    %c10 = arith.constant 10 : index
    %c0_69 = arith.constant 0 : index
    %c0_70 = arith.constant 0 : index
    %136 = vector.load %arg4[%c10, %c0_69, %c0_70] : memref<25x16x120xf32, #tpu.memory_space<vmem>>, vector<1x16x120xf32>
    %137 = vector.shape_cast %136 : vector<1x16x120xf32> to vector<16x120xf32>
    %cst_71 = arith.constant dense<0.000000e+00> : vector<2x120xf32>
    %138 = tpu.matmul %135, %137, %cst_71 {dimension_numbers = #tpu.dot_dimension_numbers<[1], [0], [0], [1], [0, 0, 1, 1], [], []>} : vector<2x16xf32>, vector<16x120xf32>, vector<2x120xf32> -> vector<2x120xf32>
    %139 = arith.addf %134, %138 : vector<2x120xf32>
    %140 = vector.extract_strided_slice %83 {offsets = [22, 0], sizes = [2, 16], strides = [1, 1]} : vector<50x16xf32> to vector<2x16xf32>
    %c11 = arith.constant 11 : index
    %c0_72 = arith.constant 0 : index
    %c0_73 = arith.constant 0 : index
    %141 = vector.load %arg4[%c11, %c0_72, %c0_73] : memref<25x16x120xf32, #tpu.memory_space<vmem>>, vector<1x16x120xf32>
    %142 = vector.shape_cast %141 : vector<1x16x120xf32> to vector<16x120xf32>
    %cst_74 = arith.constant dense<0.000000e+00> : vector<2x120xf32>
    %143 = tpu.matmul %140, %142, %cst_74 {dimension_numbers = #tpu.dot_dimension_numbers<[1], [0], [0], [1], [0, 0, 1, 1], [], []>} : vector<2x16xf32>, vector<16x120xf32>, vector<2x120xf32> -> vector<2x120xf32>
    %144 = arith.addf %139, %143 : vector<2x120xf32>
    %145 = vector.extract_strided_slice %83 {offsets = [24, 0], sizes = [2, 16], strides = [1, 1]} : vector<50x16xf32> to vector<2x16xf32>
    %c12 = arith.constant 12 : index
    %c0_75 = arith.constant 0 : index
    %c0_76 = arith.constant 0 : index
    %146 = vector.load %arg4[%c12, %c0_75, %c0_76] : memref<25x16x120xf32, #tpu.memory_space<vmem>>, vector<1x16x120xf32>
    %147 = vector.shape_cast %146 : vector<1x16x120xf32> to vector<16x120xf32>
    %cst_77 = arith.constant dense<0.000000e+00> : vector<2x120xf32>
    %148 = tpu.matmul %145, %147, %cst_77 {dimension_numbers = #tpu.dot_dimension_numbers<[1], [0], [0], [1], [0, 0, 1, 1], [], []>} : vector<2x16xf32>, vector<16x120xf32>, vector<2x120xf32> -> vector<2x120xf32>
    %149 = arith.addf %144, %148 : vector<2x120xf32>
    %150 = vector.extract_strided_slice %83 {offsets = [26, 0], sizes = [2, 16], strides = [1, 1]} : vector<50x16xf32> to vector<2x16xf32>
    %c13 = arith.constant 13 : index
    %c0_78 = arith.constant 0 : index
    %c0_79 = arith.constant 0 : index
    %151 = vector.load %arg4[%c13, %c0_78, %c0_79] : memref<25x16x120xf32, #tpu.memory_space<vmem>>, vector<1x16x120xf32>
    %152 = vector.shape_cast %151 : vector<1x16x120xf32> to vector<16x120xf32>
    %cst_80 = arith.constant dense<0.000000e+00> : vector<2x120xf32>
    %153 = tpu.matmul %150, %152, %cst_80 {dimension_numbers = #tpu.dot_dimension_numbers<[1], [0], [0], [1], [0, 0, 1, 1], [], []>} : vector<2x16xf32>, vector<16x120xf32>, vector<2x120xf32> -> vector<2x120xf32>
    %154 = arith.addf %149, %153 : vector<2x120xf32>
    %155 = vector.extract_strided_slice %83 {offsets = [28, 0], sizes = [2, 16], strides = [1, 1]} : vector<50x16xf32> to vector<2x16xf32>
    %c14 = arith.constant 14 : index
    %c0_81 = arith.constant 0 : index
    %c0_82 = arith.constant 0 : index
    %156 = vector.load %arg4[%c14, %c0_81, %c0_82] : memref<25x16x120xf32, #tpu.memory_space<vmem>>, vector<1x16x120xf32>
    %157 = vector.shape_cast %156 : vector<1x16x120xf32> to vector<16x120xf32>
    %cst_83 = arith.constant dense<0.000000e+00> : vector<2x120xf32>
    %158 = tpu.matmul %155, %157, %cst_83 {dimension_numbers = #tpu.dot_dimension_numbers<[1], [0], [0], [1], [0, 0, 1, 1], [], []>} : vector<2x16xf32>, vector<16x120xf32>, vector<2x120xf32> -> vector<2x120xf32>
    %159 = arith.addf %154, %158 : vector<2x120xf32>
    %160 = vector.extract_strided_slice %83 {offsets = [30, 0], sizes = [2, 16], strides = [1, 1]} : vector<50x16xf32> to vector<2x16xf32>
    %c15 = arith.constant 15 : index
    %c0_84 = arith.constant 0 : index
    %c0_85 = arith.constant 0 : index
    %161 = vector.load %arg4[%c15, %c0_84, %c0_85] : memref<25x16x120xf32, #tpu.memory_space<vmem>>, vector<1x16x120xf32>
    %162 = vector.shape_cast %161 : vector<1x16x120xf32> to vector<16x120xf32>
    %cst_86 = arith.constant dense<0.000000e+00> : vector<2x120xf32>
    %163 = tpu.matmul %160, %162, %cst_86 {dimension_numbers = #tpu.dot_dimension_numbers<[1], [0], [0], [1], [0, 0, 1, 1], [], []>} : vector<2x16xf32>, vector<16x120xf32>, vector<2x120xf32> -> vector<2x120xf32>
    %164 = arith.addf %159, %163 : vector<2x120xf32>
    %165 = vector.extract_strided_slice %83 {offsets = [32, 0], sizes = [2, 16], strides = [1, 1]} : vector<50x16xf32> to vector<2x16xf32>
    %c16 = arith.constant 16 : index
    %c0_87 = arith.constant 0 : index
    %c0_88 = arith.constant 0 : index
    %166 = vector.load %arg4[%c16, %c0_87, %c0_88] : memref<25x16x120xf32, #tpu.memory_space<vmem>>, vector<1x16x120xf32>
    %167 = vector.shape_cast %166 : vector<1x16x120xf32> to vector<16x120xf32>
    %cst_89 = arith.constant dense<0.000000e+00> : vector<2x120xf32>
    %168 = tpu.matmul %165, %167, %cst_89 {dimension_numbers = #tpu.dot_dimension_numbers<[1], [0], [0], [1], [0, 0, 1, 1], [], []>} : vector<2x16xf32>, vector<16x120xf32>, vector<2x120xf32> -> vector<2x120xf32>
    %169 = arith.addf %164, %168 : vector<2x120xf32>
    %170 = vector.extract_strided_slice %83 {offsets = [34, 0], sizes = [2, 16], strides = [1, 1]} : vector<50x16xf32> to vector<2x16xf32>
    %c17 = arith.constant 17 : index
    %c0_90 = arith.constant 0 : index
    %c0_91 = arith.constant 0 : index
    %171 = vector.load %arg4[%c17, %c0_90, %c0_91] : memref<25x16x120xf32, #tpu.memory_space<vmem>>, vector<1x16x120xf32>
    %172 = vector.shape_cast %171 : vector<1x16x120xf32> to vector<16x120xf32>
    %cst_92 = arith.constant dense<0.000000e+00> : vector<2x120xf32>
    %173 = tpu.matmul %170, %172, %cst_92 {dimension_numbers = #tpu.dot_dimension_numbers<[1], [0], [0], [1], [0, 0, 1, 1], [], []>} : vector<2x16xf32>, vector<16x120xf32>, vector<2x120xf32> -> vector<2x120xf32>
    %174 = arith.addf %169, %173 : vector<2x120xf32>
    %175 = vector.extract_strided_slice %83 {offsets = [36, 0], sizes = [2, 16], strides = [1, 1]} : vector<50x16xf32> to vector<2x16xf32>
    %c18 = arith.constant 18 : index
    %c0_93 = arith.constant 0 : index
    %c0_94 = arith.constant 0 : index
    %176 = vector.load %arg4[%c18, %c0_93, %c0_94] : memref<25x16x120xf32, #tpu.memory_space<vmem>>, vector<1x16x120xf32>
    %177 = vector.shape_cast %176 : vector<1x16x120xf32> to vector<16x120xf32>
    %cst_95 = arith.constant dense<0.000000e+00> : vector<2x120xf32>
    %178 = tpu.matmul %175, %177, %cst_95 {dimension_numbers = #tpu.dot_dimension_numbers<[1], [0], [0], [1], [0, 0, 1, 1], [], []>} : vector<2x16xf32>, vector<16x120xf32>, vector<2x120xf32> -> vector<2x120xf32>
    %179 = arith.addf %174, %178 : vector<2x120xf32>
    %180 = vector.extract_strided_slice %83 {offsets = [38, 0], sizes = [2, 16], strides = [1, 1]} : vector<50x16xf32> to vector<2x16xf32>
    %c19 = arith.constant 19 : index
    %c0_96 = arith.constant 0 : index
    %c0_97 = arith.constant 0 : index
    %181 = vector.load %arg4[%c19, %c0_96, %c0_97] : memref<25x16x120xf32, #tpu.memory_space<vmem>>, vector<1x16x120xf32>
    %182 = vector.shape_cast %181 : vector<1x16x120xf32> to vector<16x120xf32>
    %cst_98 = arith.constant dense<0.000000e+00> : vector<2x120xf32>
    %183 = tpu.matmul %180, %182, %cst_98 {dimension_numbers = #tpu.dot_dimension_numbers<[1], [0], [0], [1], [0, 0, 1, 1], [], []>} : vector<2x16xf32>, vector<16x120xf32>, vector<2x120xf32> -> vector<2x120xf32>
    %184 = arith.addf %179, %183 : vector<2x120xf32>
    %185 = vector.extract_strided_slice %83 {offsets = [40, 0], sizes = [2, 16], strides = [1, 1]} : vector<50x16xf32> to vector<2x16xf32>
    %c20 = arith.constant 20 : index
    %c0_99 = arith.constant 0 : index
    %c0_100 = arith.constant 0 : index
    %186 = vector.load %arg4[%c20, %c0_99, %c0_100] : memref<25x16x120xf32, #tpu.memory_space<vmem>>, vector<1x16x120xf32>
    %187 = vector.shape_cast %186 : vector<1x16x120xf32> to vector<16x120xf32>
    %cst_101 = arith.constant dense<0.000000e+00> : vector<2x120xf32>
    %188 = tpu.matmul %185, %187, %cst_101 {dimension_numbers = #tpu.dot_dimension_numbers<[1], [0], [0], [1], [0, 0, 1, 1], [], []>} : vector<2x16xf32>, vector<16x120xf32>, vector<2x120xf32> -> vector<2x120xf32>
    %189 = arith.addf %184, %188 : vector<2x120xf32>
    %190 = vector.extract_strided_slice %83 {offsets = [42, 0], sizes = [2, 16], strides = [1, 1]} : vector<50x16xf32> to vector<2x16xf32>
    %c21 = arith.constant 21 : index
    %c0_102 = arith.constant 0 : index
    %c0_103 = arith.constant 0 : index
    %191 = vector.load %arg4[%c21, %c0_102, %c0_103] : memref<25x16x120xf32, #tpu.memory_space<vmem>>, vector<1x16x120xf32>
    %192 = vector.shape_cast %191 : vector<1x16x120xf32> to vector<16x120xf32>
    %cst_104 = arith.constant dense<0.000000e+00> : vector<2x120xf32>
    %193 = tpu.matmul %190, %192, %cst_104 {dimension_numbers = #tpu.dot_dimension_numbers<[1], [0], [0], [1], [0, 0, 1, 1], [], []>} : vector<2x16xf32>, vector<16x120xf32>, vector<2x120xf32> -> vector<2x120xf32>
    %194 = arith.addf %189, %193 : vector<2x120xf32>
    %195 = vector.extract_strided_slice %83 {offsets = [44, 0], sizes = [2, 16], strides = [1, 1]} : vector<50x16xf32> to vector<2x16xf32>
    %c22 = arith.constant 22 : index
    %c0_105 = arith.constant 0 : index
    %c0_106 = arith.constant 0 : index
    %196 = vector.load %arg4[%c22, %c0_105, %c0_106] : memref<25x16x120xf32, #tpu.memory_space<vmem>>, vector<1x16x120xf32>
    %197 = vector.shape_cast %196 : vector<1x16x120xf32> to vector<16x120xf32>
    %cst_107 = arith.constant dense<0.000000e+00> : vector<2x120xf32>
    %198 = tpu.matmul %195, %197, %cst_107 {dimension_numbers = #tpu.dot_dimension_numbers<[1], [0], [0], [1], [0, 0, 1, 1], [], []>} : vector<2x16xf32>, vector<16x120xf32>, vector<2x120xf32> -> vector<2x120xf32>
    %199 = arith.addf %194, %198 : vector<2x120xf32>
    %200 = vector.extract_strided_slice %83 {offsets = [46, 0], sizes = [2, 16], strides = [1, 1]} : vector<50x16xf32> to vector<2x16xf32>
    %c23 = arith.constant 23 : index
    %c0_108 = arith.constant 0 : index
    %c0_109 = arith.constant 0 : index
    %201 = vector.load %arg4[%c23, %c0_108, %c0_109] : memref<25x16x120xf32, #tpu.memory_space<vmem>>, vector<1x16x120xf32>
    %202 = vector.shape_cast %201 : vector<1x16x120xf32> to vector<16x120xf32>
    %cst_110 = arith.constant dense<0.000000e+00> : vector<2x120xf32>
    %203 = tpu.matmul %200, %202, %cst_110 {dimension_numbers = #tpu.dot_dimension_numbers<[1], [0], [0], [1], [0, 0, 1, 1], [], []>} : vector<2x16xf32>, vector<16x120xf32>, vector<2x120xf32> -> vector<2x120xf32>
    %204 = arith.addf %199, %203 : vector<2x120xf32>
    %205 = vector.extract_strided_slice %83 {offsets = [48, 0], sizes = [2, 16], strides = [1, 1]} : vector<50x16xf32> to vector<2x16xf32>
    %c24 = arith.constant 24 : index
    %c0_111 = arith.constant 0 : index
    %c0_112 = arith.constant 0 : index
    %206 = vector.load %arg4[%c24, %c0_111, %c0_112] : memref<25x16x120xf32, #tpu.memory_space<vmem>>, vector<1x16x120xf32>
    %207 = vector.shape_cast %206 : vector<1x16x120xf32> to vector<16x120xf32>
    %cst_113 = arith.constant dense<0.000000e+00> : vector<2x120xf32>
    %208 = tpu.matmul %205, %207, %cst_113 {dimension_numbers = #tpu.dot_dimension_numbers<[1], [0], [0], [1], [0, 0, 1, 1], [], []>} : vector<2x16xf32>, vector<16x120xf32>, vector<2x120xf32> -> vector<2x120xf32>
    %209 = arith.addf %204, %208 : vector<2x120xf32>
    %c0_114 = arith.constant 0 : index
    %c0_115 = arith.constant 0 : index
    %210 = vector.load %arg5[%c0_114, %c0_115] : memref<1x120xf32, #tpu.memory_space<vmem>>, vector<1x120xf32>
    %211 = vector.broadcast %210 : vector<1x120xf32> to vector<2x120xf32>
    %212 = arith.addf %209, %211 : vector<2x120xf32>
    %cst_116 = arith.constant 0.000000e+00 : f32
    %213 = vector.broadcast %cst_116 : f32 to vector<2x120xf32>
    %214 = arith.maximumf %212, %213 : vector<2x120xf32>
    %c0_117 = arith.constant 0 : index
    %c0_118 = arith.constant 0 : index
    %215 = vector.load %arg6[%c0_117, %c0_118] : memref<120x120xf32, #tpu.memory_space<vmem>>, vector<120x120xf32>
    %cst_119 = arith.constant dense<0.000000e+00> : vector<2x120xf32>
    %216 = tpu.matmul %214, %215, %cst_119 {dimension_numbers = #tpu.dot_dimension_numbers<[1], [0], [0], [1], [0, 0, 1, 1], [], []>} : vector<2x120xf32>, vector<120x120xf32>, vector<2x120xf32> -> vector<2x120xf32>
    %c0_120 = arith.constant 0 : index
    %c0_121 = arith.constant 0 : index
    %217 = vector.load %arg7[%c0_120, %c0_121] : memref<1x120xf32, #tpu.memory_space<vmem>>, vector<1x120xf32>
    %218 = vector.broadcast %217 : vector<1x120xf32> to vector<2x120xf32>
    %219 = arith.addf %216, %218 : vector<2x120xf32>
    %cst_122 = arith.constant 0.000000e+00 : f32
    %220 = vector.broadcast %cst_122 : f32 to vector<2x120xf32>
    %221 = arith.maximumf %219, %220 : vector<2x120xf32>
    %c0_123 = arith.constant 0 : index
    %c0_124 = arith.constant 0 : index
    %222 = vector.load %arg8[%c0_123, %c0_124] : memref<120x30xf32, #tpu.memory_space<vmem>>, vector<120x30xf32>
    %cst_125 = arith.constant dense<0.000000e+00> : vector<2x30xf32>
    %223 = tpu.matmul %221, %222, %cst_125 {dimension_numbers = #tpu.dot_dimension_numbers<[1], [0], [0], [1], [0, 0, 1, 1], [], []>} : vector<2x120xf32>, vector<120x30xf32>, vector<2x30xf32> -> vector<2x30xf32>
    %c0_126 = arith.constant 0 : index
    %c0_127 = arith.constant 0 : index
    %224 = vector.load %arg9[%c0_126, %c0_127] : memref<1x30xf32, #tpu.memory_space<vmem>>, vector<1x30xf32>
    %225 = vector.broadcast %224 : vector<1x30xf32> to vector<2x30xf32>
    %226 = arith.addf %223, %225 : vector<2x30xf32>
    %227 = math.tanh %226 : vector<2x30xf32>
    %228 = arith.mulf %227, %227 : vector<2x30xf32>
    %cst_128 = arith.constant dense<0.000000e+00> : vector<2xf32>
    %229 = vector.multi_reduction <add>, %228, %cst_128 [1] : vector<2x30xf32> to vector<2xf32>
    %230 = vector.shape_cast %229 : vector<2xf32> to vector<2x1xf32>
    %cst_129 = arith.constant 1.000000e-24 : f32
    %231 = vector.broadcast %cst_129 : f32 to vector<2x1xf32>
    %232 = arith.maximumf %230, %231 : vector<2x1xf32>
    %233 = math.rsqrt %232 : vector<2x1xf32>
    %234 = vector.broadcast %233 : vector<2x1xf32> to vector<2x30xf32>
    %235 = arith.mulf %227, %234 : vector<2x30xf32>
    %c0_130 = arith.constant 0 : index
    %c0_131 = arith.constant 0 : index
    %236 = vector.load %arg10[%c0_130, %c0_131] : memref<2x30xf32, #tpu.memory_space<vmem>>, vector<2x30xf32>
    tpu.vector_store %arg10[%c0_130, %c0_131], %235 {strides = array<i32>} : memref<2x30xf32, #tpu.memory_space<vmem>>, vector<2x30xf32>,
    return
  }
}

</mosaic_0001>

<bundles_post_ra>
// kernel: cnn_forward.2
= control target key start
LH: loop header
LB: loop body
LE: loop exit
PB: predicated region body
PF: predicated region fallthrough
CT: control target
= control target key end

     0   :  { %vm38_vm0 = vcmask 1040384   ;;  %v1018_v3 = vmov 0.0   ;;  %vm1019_vm1 = vmmov 1   ;;  %vm34_vm3 = vcmask 203776   ;;  %s1400_s0 = inlined_call_operand.vmem [shape: f32[4,25,512], index: 0, kind: input, shape index: {}]   ;;  %s1401_s1 = inlined_call_operand.vmem [shape: f32[8,25], index: 1, kind: input, shape index: {}]   ;;  %s1402_s2 = inlined_call_operand.vmem [shape: f32[8,1], index: 2, kind: input, shape index: {}]   ;;  %s1403_s3 = inlined_call_operand.vmem [shape: f32[8,1], index: 3, kind: input, shape index: {}]   ;;  %s1404_s4 = inlined_call_operand.vmem [shape: f32[8,512], index: 4, kind: output, shape index: {}]  }
   0x1   :  { %v19_v0 = vld [vmem:[%s1400_s0 + $0x8] sm:$0xff]  ;;  %v18_v2 = vld [vmem:[%s1400_s0] sm:$0xff]  ;;  %115 = vmatprep.mubr.f32.mxu0 %v1018_v3  ;;  %186 = vmatprep.mubr.f32.mxu1 %v1018_v3  ;;  %v21_v6 = vld [vmem:[%s1400_s0 + $0x18] sm:$0xff] }
   0x2   :  { %v23_v1 = vld [vmem:[%s1400_s0 + $0x28] sm:$0xff]  ;;  %v22_v5 = vld [vmem:[%s1400_s0 + $0x20] sm:$0xff]  ;;  %v25_v7 = vld [vmem:[%s1400_s0 + $0x38] sm:$0xff] }
   0x3   :  { %v931_v4 = vpack.c.bf16 %v23_v1, %v19_v0  ;;  %v933_v8 = vpack.c.bf16 %v22_v5, %v18_v2  ;;  %v941_v9 = vpack.c.bf16 %v25_v7, %v21_v6  ;;  %v20_v10 = vld [vmem:[%s1400_s0 + $0x10] sm:$0xff]  ;;  %v27_v12 = vld [vmem:[%s1400_s0 + $0x48] sm:$0xff]  ;;  %vm1079_vm2 = vmpackc.low %vm38_vm0, %vm1019_vm1 }
   0x4   :  { %v24_v11 = vld [vmem:[%s1400_s0 + $0x30] sm:$0xff]  ;;  %v31_v14 = vld [vmem:[%s1400_s0 + $0x68] sm:$0x1]  ;;  %v26_v16 = vld [vmem:[%s1400_s0 + $0x40] sm:$0xff] }
   0x5   :  { %932 = vmatprep.subr.bf16.mxu0 %v931_v4  ;;  %v943_v13 = vpack.c.bf16 %v24_v11, %v20_v10  ;;  %942 = vmatprep.subr.bf16.mxu1 %v941_v9  ;;  %v935_v17 = vpack.c.bf16 %v31_v14, %v27_v12  ;;  %v30_v18 = vld [vmem:[%s1400_s0 + $0x60] sm:$0x1]  ;;  %v29_v19 = vld [vmem:[%s1400_s0 + $0x58] sm:$0xff]  ;;  %v28_v23 = vld [vmem:[%s1400_s0 + $0x50] sm:$0xff] }
   0x6   :  { %934 = vmatpush1.bf16.msra.mxu0 %v933_v8  ;;  %v33_v20 = vld [vmem:[%s1400_s0 + $0x78] sm:$0x1]  ;;  %v938_v21 = vpack.c.bf16 %v30_v18, %v26_v16  ;;  %v32_v24 = vld [vmem:[%s1400_s0 + $0x70] sm:$0x1]  ;;  %v1106_v26 = vld [vmem:[%s1401_s1] sm:$0xff] }
   0x7   :  { %944 = vmatpush1.bf16.msra.mxu1 %v943_v13  ;;  %v945_v22 = vpack.c.bf16 %v33_v20, %v29_v19  ;;  %937 = vmatprep.subr.msk.bf16.mxu0 %vm1079_vm2, %v935_v17  ;;  %v948_v25 = vpack.c.bf16 %v32_v24, %v28_v23  ;;  %v866_v27 = vld [vmem:[%s1400_s0 + $0x88] sm:$0xff]  ;;  %v865_v29 = vld [vmem:[%s1400_s0 + $0x80] sm:$0xff]  ;;  %v868_v32 = vld [vmem:[%s1400_s0 + $0x98] sm:$0xff] }
   0x8   :  { %v870_v28 = vld [vmem:[%s1400_s0 + $0xa8] sm:$0xff]  ;;  %v869_v31 = vld [vmem:[%s1400_s0 + $0xa0] sm:$0xff]  ;;  %v872_v33 = vld [vmem:[%s1400_s0 + $0xb8] sm:$0xff] }
   0x9   :  { %947 = vmatprep.subr.msk.bf16.mxu1 %vm1079_vm2, %v945_v22  ;;  %v951_v30 = vpack.c.bf16 %v870_v28, %v866_v27  ;;  %v953_v34 = vpack.c.bf16 %v869_v31, %v865_v29  ;;  %v961_v35 = vpack.c.bf16 %v872_v33, %v868_v32  ;;  %v867_v36 = vld [vmem:[%s1400_s0 + $0x90] sm:$0xff]  ;;  %v874_v38 = vld [vmem:[%s1400_s0 + $0xc8] sm:$0xff]  ;;  %v873_v41 = vld [vmem:[%s1400_s0 + $0xc0] sm:$0xff] }
   0xa   :  { %940 = vmatpush1.bf16.msk.msra.mxu0 %vm1079_vm2, %v938_v21  ;;  %v871_v37 = vld [vmem:[%s1400_s0 + $0xb0] sm:$0xff]  ;;  %v878_v40 = vld [vmem:[%s1400_s0 + $0xe8] sm:$0x1]  ;;  %v877_v42 = vld [vmem:[%s1400_s0 + $0xe0] sm:$0x1] }
   0xb   :  { %950 = vmatpush1.bf16.msk.msra.mxu1 %vm1079_vm2, %v948_v25  ;;  %952 = vmatprep.subr.bf16.mxu0 %v951_v30  ;;  %v963_v39 = vpack.c.bf16 %v871_v37, %v867_v36  ;;  %v955_v43 = vpack.c.bf16 %v878_v40, %v874_v38  ;;  %v876_v44 = vld [vmem:[%s1400_s0 + $0xd8] sm:$0xff]  ;;  %v875_v46 = vld [vmem:[%s1400_s0 + $0xd0] sm:$0xff]  ;;  %v888_v49 = vld [vmem:[%s1400_s0 + $0x108] sm:$0xff]  ;;  %v958_v51 = vpack.c.bf16 %v877_v42, %v873_v41 }
   0xc   :  { %962 = vmatprep.subr.bf16.mxu1 %v961_v35  ;;  %v880_v45 = vld [vmem:[%s1400_s0 + $0xf8] sm:$0x1]  ;;  %v879_v48 = vld [vmem:[%s1400_s0 + $0xf0] sm:$0x1]  ;;  %v892_v50 = vld [vmem:[%s1400_s0 + $0x128] sm:$0xff] }
   0xd   :  { %861 = vmatmul.mubr.msk.f32.vlgmr.msra.gmra.mrb[0].mxu0 %vm34_vm3, %v1106_v26  ;;  %v965_v47 = vpack.c.bf16 %v880_v45, %v876_v44  ;;  %v887_v52 = vld [vmem:[%s1400_s0 + $0x100] sm:$0xff]  ;;  %v890_v53 = vld [vmem:[%s1400_s0 + $0x118] sm:$0xff]  ;;  %v968_v54 = vpack.c.bf16 %v879_v48, %v875_v46  ;;  %v971_v55 = vpack.c.bf16 %v892_v50, %v888_v49  ;;  %v889_v58 = vld [vmem:[%s1400_s0 + $0x110] sm:$0xff] }
   0xe   :  { %954 = vmatpush1.bf16.msra.mxu0 %v953_v34  ;;  %864 = vmatmul.mubr.msk.f32.vlgmr.msra.gmra.mrb[0].mxu1 %vm34_vm3, %v1106_v26  ;;  %v891_v56 = vld [vmem:[%s1400_s0 + $0x120] sm:$0xff]  ;;  %v894_v57 = vld [vmem:[%s1400_s0 + $0x138] sm:$0xff]  ;;  %v893_v60 = vld [vmem:[%s1400_s0 + $0x130] sm:$0xff] }
   0xf   :  { %964 = vmatpush1.bf16.msra.mxu1 %v963_v39  ;;  %957 = vmatprep.subr.msk.bf16.mxu0 %vm1079_vm2, %v955_v43  ;;  %v981_v59 = vpack.c.bf16 %v894_v57, %v890_v53  ;;  %v896_v61 = vld [vmem:[%s1400_s0 + $0x148] sm:$0xff]  ;;  %v898_v63 = vld [vmem:[%s1400_s0 + $0x158] sm:$0xff]  ;;  %v973_v1 = vpack.c.bf16 %v891_v56, %v887_v52  ;;  %v983_v2 = vpack.c.bf16 %v893_v60, %v889_v58  ;;  %v895_v5 = vld [vmem:[%s1400_s0 + $0x140] sm:$0xff] }
  0x10   :  { %967 = vmatprep.subr.msk.bf16.mxu1 %vm1079_vm2, %v965_v47  ;;  %286 = vmatprep.mubr.f32.mxu0 %v1018_v3  ;;  %v900_v62 = vld [vmem:[%s1400_s0 + $0x168] sm:$0x1]  ;;  %v902_v0 = vld [vmem:[%s1400_s0 + $0x178] sm:$0x1]  ;;  %v899_v6 = vld [vmem:[%s1400_s0 + $0x160] sm:$0x1] }
  0x11   :  { %357 = vmatprep.mubr.f32.mxu1 %v1018_v3  ;;  %v975_v4 = vpack.c.bf16 %v900_v62, %v896_v61  ;;  %v897_v7 = vld [vmem:[%s1400_s0 + $0x150] sm:$0xff]  ;;  %v985_v8 = vpack.c.bf16 %v902_v0, %v898_v63  ;;  %v910_v10 = vld [vmem:[%s1400_s0 + $0x188] sm:$0xff]  ;;  %v912_v12 = vld [vmem:[%s1400_s0 + $0x198] sm:$0xff]  ;;  %v978_v14 = vpack.c.bf16 %v899_v6, %v895_v5 }
  0x12   :  { %960 = vmatpush1.bf16.msk.msra.mxu0 %vm1079_vm2, %v958_v51  ;;  %v901_v9 = vld [vmem:[%s1400_s0 + $0x170] sm:$0x1]  ;;  %v914_v11 = vld [vmem:[%s1400_s0 + $0x1a8] sm:$0xff]  ;;  %v916_v13 = vld [vmem:[%s1400_s0 + $0x1b8] sm:$0xff] }
  0x13   :  { %970 = vmatpush1.bf16.msk.msra.mxu1 %vm1079_vm2, %v968_v54  ;;  %972 = vmatprep.subr.bf16.mxu0 %v971_v55  ;;  %v988_v16 = vpack.c.bf16 %v901_v9, %v897_v7  ;;  %v991_v17 = vpack.c.bf16 %v914_v11, %v910_v10  ;;  %v909_v18 = vld [vmem:[%s1400_s0 + $0x180] sm:$0xff]  ;;  %v911_v20 = vld [vmem:[%s1400_s0 + $0x190] sm:$0xff]  ;;  %v1001_v21 = vpack.c.bf16 %v916_v13, %v912_v12  ;;  %v918_v23 = vld [vmem:[%s1400_s0 + $0x1c8] sm:$0xff] }
  0x14   :  { %982 = vmatprep.subr.bf16.mxu1 %v981_v59  ;;  %v913_v19 = vld [vmem:[%s1400_s0 + $0x1a0] sm:$0xff]  ;;  %v915_v22 = vld [vmem:[%s1400_s0 + $0x1b0] sm:$0xff]  ;;  %v922_v24 = vld [vmem:[%s1400_s0 + $0x1e8] sm:$0x1] }
  0x15   :  { %883 = vmatmul.mubr.msk.f32.vlgmr.msra.gmra.mrb[2].mxu0 %vm34_vm3, %v1106_v26  ;;  %v920_v25 = vld [vmem:[%s1400_s0 + $0x1d8] sm:$0xff]  ;;  %v993_v28 = vpack.c.bf16 %v913_v19, %v909_v18  ;;  %v1003_v29 = vpack.c.bf16 %v915_v22, %v911_v20  ;;  %v995_v30 = vpack.c.bf16 %v922_v24, %v918_v23  ;;  %v917_v31 = vld [vmem:[%s1400_s0 + $0x1c0] sm:$0xff]  ;;  %v919_v34 = vld [vmem:[%s1400_s0 + $0x1d0] sm:$0xff] }
  0x16   :  { %974 = vmatpush1.bf16.msra.mxu0 %v973_v1  ;;  %886 = vmatmul.mubr.msk.f32.vlgmr.msra.gmra.mrb[2].mxu1 %vm34_vm3, %v1106_v26  ;;  %v924_v27 = vld [vmem:[%s1400_s0 + $0x1f8] sm:$0x1]  ;;  %v921_v32 = vld [vmem:[%s1400_s0 + $0x1e0] sm:$0x1]  ;;  %v923_v35 = vld [vmem:[%s1400_s0 + $0x1f0] sm:$0x1] }
  0x17   :  { %984 = vmatpush1.bf16.msra.mxu1 %v983_v2  ;;  %977 = vmatprep.subr.msk.bf16.mxu0 %vm1079_vm2, %v975_v4  ;;  %v1005_v33 = vpack.c.bf16 %v924_v27, %v920_v25  ;;  %v998_v36 = vpack.c.bf16 %v921_v32, %v917_v31  ;;  %v1008_v37 = vpack.c.bf16 %v923_v35, %v919_v34 }
  0x18   :  { %987 = vmatprep.subr.msk.bf16.mxu1 %vm1079_vm2, %v985_v8  ;;  %457 = vmatprep.mubr.f32.mxu0 %v1018_v3 }
  0x19   :  { %528 = vmatprep.mubr.f32.mxu1 %v1018_v3 }
  0x1a   :  { %980 = vmatpush1.bf16.msk.msra.mxu0 %vm1079_vm2, %v978_v14 }
  0x1b   :  { %990 = vmatpush1.bf16.msk.msra.mxu1 %vm1079_vm2, %v988_v16  ;;  %992 = vmatprep.subr.bf16.mxu0 %v991_v17 }
  0x1c   :  { %1002 = vmatprep.subr.bf16.mxu1 %v1001_v21 }
  0x1d   :  { %905 = vmatmul.mubr.msk.f32.vlgmr.msra.gmra.mrb[4].mxu0 %vm34_vm3, %v1106_v26 }
  0x1e   :  { %994 = vmatpush1.bf16.msra.mxu0 %v993_v28  ;;  %908 = vmatmul.mubr.msk.f32.vlgmr.msra.gmra.mrb[4].mxu1 %vm34_vm3, %v1106_v26 }
  0x1f   :  { %1004 = vmatpush1.bf16.msra.mxu1 %v1003_v29  ;;  %997 = vmatprep.subr.msk.bf16.mxu0 %vm1079_vm2, %v995_v30  ;;  %v1020_v30 = vmov 0  }
  0x20   :  { %1007 = vmatprep.subr.msk.bf16.mxu1 %vm1079_vm2, %v1005_v33  ;;  %628 = vmatprep.mubr.f32.mxu0 %v1018_v3 }
  0x21   :  { %699 = vmatprep.mubr.f32.mxu1 %v1018_v3  ;;  %1014 = vset.pattern.permute.xlu0 %v1020_v30 }
  0x22   :  { %1000 = vmatpush1.bf16.msk.msra.mxu0 %vm1079_vm2, %v998_v36  ;;  %1015 = vset.pattern.permute.xlu1 %v1020_v30 }
  0x23   :  { %1010 = vmatpush1.bf16.msk.msra.mxu1 %vm1079_vm2, %v1008_v37 }
  0x25   :  { %927 = vmatmul.mubr.msk.f32.vlgmr.msra.gmra.mrb[6].mxu0 %vm34_vm3, %v1106_v26 }
  0x26   :  { %930 = vmatmul.mubr.msk.f32.vlgmr.msra.gmra.mrb[6].mxu1 %vm34_vm3, %v1106_v26 }
  0xe0   :  { %v1304_v38 = vpop.f32.mrb[0].mxu0 }
  0xe1   :  { %v730_v39 = vmul.f32 %v1304_v38, %v1304_v38  ;;  %v1308_v40 = vpop.f32.mrb[1].mxu0  ;;  %v1310_v3 = vpop.f32.mrb[0].mxu1 }
  0xe2   :  { %v706_v41 = vadd.f32 %v1308_v40, %v1304_v38  ;;  %v731_v15 = vmul.f32 %v1308_v40, %v1308_v40  ;;  %v732_v42 = vmul.f32 %v1310_v3, %v1310_v3  ;;  %v1318_v43 = vpop.f32.mrb[1].mxu1 }
  0xe3   :  { %v733_v44 = vmul.f32 %v1318_v43, %v1318_v43 }
  0xe4   :  { %v707_v26 = vadd.f32 %v706_v41, %v1310_v3  ;;  %v734_v45 = vadd.f32 %v731_v15, %v730_v39 }
  0xe6   :  { %v708_v46 = vadd.f32 %v707_v26, %v1318_v43  ;;  %v735_v47 = vadd.f32 %v734_v45, %v732_v42 }
  0xe8   :  { %709 = vadd.xlane.f32.xlu0 %v708_v46  ;;  %v1324_v48 = vpop.f32.mrb[2].mxu0  ;;  %v736_v49 = vadd.f32 %v735_v47, %v733_v44 }
  0xe9   :  { %v740_v50 = vmul.f32 %v1324_v48, %v1324_v48  ;;  %v1328_v51 = vpop.f32.mrb[3].mxu0  ;;  %v1330_v52 = vpop.f32.mrb[2].mxu1 }
  0xea   :  { %v712_v53 = vadd.f32 %v1328_v51, %v1324_v48  ;;  %v741_v54 = vmul.f32 %v1328_v51, %v1328_v51  ;;  %737 = vadd.xlane.f32.xlu1 %v736_v49  ;;  %v742_v55 = vmul.f32 %v1330_v52, %v1330_v52  ;;  %v1338_v56 = vpop.f32.mrb[3].mxu1 }
  0xeb   :  { %v743_v58 = vmul.f32 %v1338_v56, %v1338_v56 }
  0xec   :  { %v713_v57 = vadd.f32 %v712_v53, %v1330_v52  ;;  %v744_v59 = vadd.f32 %v741_v54, %v740_v50  ;;  %v774_v54 = vld [vmem:[%s1402_s2] sm:$0xff] }
  0xee   :  { %v714_v60 = vadd.f32 %v713_v57, %v1338_v56  ;;  %v745_v61 = vadd.f32 %v744_v59, %v742_v55 }
  0xf0   :  { %715 = vadd.xlane.f32.xlu0 %v714_v60  ;;  %v1344_v62 = vpop.f32.mrb[4].mxu0  ;;  %v746_v63 = vadd.f32 %v745_v61, %v743_v58  ;;  %v778_v58 = vld [vmem:[%s1403_s3] sm:$0xff] }
  0xf1   :  { %v750_v0 = vmul.f32 %v1344_v62, %v1344_v62  ;;  %v1348_v1 = vpop.f32.mrb[5].mxu0  ;;  %v1350_v2 = vpop.f32.mrb[4].mxu1 }
  0xf2   :  { %v718_v4 = vadd.f32 %v1348_v1, %v1344_v62  ;;  %v751_v5 = vmul.f32 %v1348_v1, %v1348_v1  ;;  %v752_v6 = vmul.f32 %v1350_v2, %v1350_v2  ;;  %v1358_v7 = vpop.f32.mrb[5].mxu1 }
  0xf3   :  { %v753_v9 = vmul.f32 %v1358_v7, %v1358_v7 }
  0xf4   :  { %747 = vadd.xlane.f32.xlu0 %v746_v63  ;;  %v719_v8 = vadd.f32 %v718_v4, %v1350_v2  ;;  %v754_v10 = vadd.f32 %v751_v5, %v750_v0 }
  0xf6   :  { %v720_v11 = vadd.f32 %v719_v8, %v1358_v7  ;;  %v755_v12 = vadd.f32 %v754_v10, %v752_v6 }
  0xf8   :  { %721 = vadd.xlane.f32.xlu1 %v720_v11  ;;  %v1364_v13 = vpop.f32.mrb[6].mxu0  ;;  %v756_v14 = vadd.f32 %v755_v12, %v753_v9 }
  0xf9   :  { %v760_v16 = vmul.f32 %v1364_v13, %v1364_v13  ;;  %v632_v17 = vpop.f32.mrb[7].mxu0  ;;  %v701_v18 = vpop.f32.mrb[6].mxu1 }
  0xfa   :  { %v724_v19 = vadd.f32 %v632_v17, %v1364_v13  ;;  %v761_v20 = vmul.f32 %v632_v17, %v632_v17  ;;  %v762_v21 = vmul.f32 %v701_v18, %v701_v18  ;;  %757 = vadd.xlane.f32.xlu0 %v756_v14  ;;  %v703_v22 = vpop.f32.mrb[7].mxu1 }
  0xfb   :  { %v763_v25 = vmul.f32 %v703_v22, %v703_v22 }
  0xfc   :  { %v764_v23 = vadd.f32 %v761_v20, %v760_v16  ;;  %v725_v24 = vadd.f32 %v724_v19, %v701_v18 }
  0xfe   :  { %v726_v27 = vadd.f32 %v725_v24, %v703_v22  ;;  %v765_v28 = vadd.f32 %v764_v23, %v762_v21 }
 0x100   :  { %727 = vadd.xlane.f32.xlu1 %v726_v27  ;;  %v766_v29 = vadd.f32 %v765_v28, %v763_v25 }
 0x104   :  { %767 = vadd.xlane.f32.xlu1 %v766_v29 }
 0x175   :  { %v710_v31 = vpop.xlane.xlu0 %709 }
 0x177   :  { %v738_v33 = vpop.xlane.xlu1 %737 }
 0x17d   :  { %v716_v32 = vpop.xlane.xlu0 %715 }
 0x17e   :  { %v717_v36 = vadd.f32 %v716_v32, %v710_v31 }
 0x181   :  { %v748_v34 = vpop.xlane.xlu0 %747 }
 0x182   :  { %v749_v15 = vadd.f32 %v748_v34, %v738_v33 }
 0x185   :  { %v722_v35 = vpop.xlane.xlu1 %721 }
 0x186   :  { %v723_v37 = vadd.f32 %v722_v35, %v717_v36 }
 0x187   :  { %v758_v39 = vpop.xlane.xlu0 %757 }
 0x188   :  { %v759_v26 = vadd.f32 %v758_v39, %v749_v15 }
 0x18d   :  { %v728_v41 = vpop.xlane.xlu1 %727 }
 0x18e   :  { %v729_v42 = vadd.f32 %v728_v41, %v723_v37 }
 0x190   :  { %v770_v44 = vmul.f32 0.0006377551, %v729_v42 }
 0x191   :  { %v768_v45 = vpop.xlane.xlu1 %767 }
 0x192   :  { %v769_v46 = vadd.f32 %v768_v45, %v759_v26  ;;  %v772_v47 = vmul.f32 %v770_v44, %v770_v44 }
 0x194   :  { %v771_v49 = vmul.f32 0.0006377551, %v769_v46 }
 0x196   :  { %v773_v50 = vsub.f32 %v771_v49, %v772_v47 }
 0x198   :  { %v775_v53 = vadd.f32 1e-05, %v773_v50 }
 0x19a   :  { %1016 = vrsqrt.f32 %v775_v53 }
 0x1a4   :  { %v1017_v55 = vpop.eup %1016 }
 0x1a5   :  { %v777_v57 = vmul.f32 %v1017_v55, %v774_v54 }
 0x1a7   :  { %783 = vperm.xlu0 %1014, %v777_v57   ;;  %v779_v59 = vmul.f32 %v777_v57, %v770_v44 }
 0x1a9   :  { %v780_v60 = vsub.f32 %v778_v58, %v779_v59 }
 0x1ab   :  { %792 = vperm.xlu1 %1015, %v780_v60  }
 0x226   :  { %v784_v61 = vpop.permute.xlu0 %783 }
 0x227   :  { %v786_v63 = vmul.f32 %v784_v61, %v1304_v38  ;;  %v787_v0 = vmul.f32 %v784_v61, %v1308_v40  ;;  %v788_v4 = vmul.f32 %v784_v61, %v1310_v3  ;;  %v789_v5 = vmul.f32 %v784_v61, %v1318_v43 }
 0x228   :  { %v803_v6 = vmul.f32 %v784_v61, %v1324_v48  ;;  %v804_v8 = vmul.f32 %v784_v61, %v1328_v51  ;;  %v805_v9 = vmul.f32 %v784_v61, %v1330_v52  ;;  %v806_v10 = vmul.f32 %v784_v61, %v1338_v56 }
 0x229   :  { %v815_v11 = vmul.f32 %v784_v61, %v1344_v62  ;;  %v816_v12 = vmul.f32 %v784_v61, %v1348_v1  ;;  %v817_v38 = vmul.f32 %v784_v61, %v1350_v2  ;;  %v818_v40 = vmul.f32 %v784_v61, %v1358_v7 }
 0x22a   :  { %v827_v3 = vmul.f32 %v784_v61, %v1364_v13  ;;  %v828_v14 = vmul.f32 %v784_v61, %v632_v17  ;;  %v829_v43 = vmul.f32 %v784_v61, %v701_v18  ;;  %v830_v16 = vmul.f32 %v784_v61, %v703_v22  ;;  %v793_v48 = vpop.permute.xlu1 %792 }
 0x22b   :  { %v795_v19 = vadd.f32 %v793_v48, %v786_v63  ;;  %v796_v51 = vadd.f32 %v793_v48, %v787_v0  ;;  %v797_v20 = vadd.f32 %v793_v48, %v788_v4  ;;  %v798_v52 = vadd.f32 %v793_v48, %v789_v5 }
 0x22c   :  { %v807_v21 = vadd.f32 %v803_v6, %v793_v48  ;;  %v808_v56 = vadd.f32 %v804_v8, %v793_v48  ;;  %v809_v23 = vadd.f32 %v805_v9, %v793_v48  ;;  %v810_v62 = vadd.f32 %v806_v10, %v793_v48 }
 0x22d   :  { %v799_v24 = vmax.f32 %v795_v19, 0.0  ;;  %v800_v1 = vmax.f32 %v796_v51, 0.0  ;;  %v801_v25 = vmax.f32 %v797_v20, 0.0  ;;  %v802_v2 = vmax.f32 %v798_v52, 0.0 }
 0x22e   :  { %v811_v27 = vmax.f32 %v807_v21, 0.0  ;;  %v812_v7 = vmax.f32 %v808_v56, 0.0  ;;  %v813_v28 = vmax.f32 %v809_v23, 0.0  ;;  %v814_v13 = vmax.f32 %v810_v62, 0.0 }
 0x22f   :  { %v819_v17 = vadd.f32 %v815_v11, %v793_v48  ;;  %v820_v18 = vadd.f32 %v816_v12, %v793_v48  ;;  %v821_v22 = vadd.f32 %v817_v38, %v793_v48  ;;  %v822_v29 = vadd.f32 %v818_v40, %v793_v48 }
 0x230   :  { %v831_v30 = vadd.f32 %v827_v3, %v793_v48  ;;  %v832_v31 = vadd.f32 %v828_v14, %v793_v48  ;;  %v833_v32 = vadd.f32 %v829_v43, %v793_v48  ;;  %v834_v33 = vadd.f32 %v830_v16, %v793_v48 }
 0x231   :  { %v823_v34 = vmax.f32 %v819_v17, 0.0  ;;  %v824_v35 = vmax.f32 %v820_v18, 0.0  ;;  %v825_v36 = vmax.f32 %v821_v22, 0.0  ;;  %v826_v37 = vmax.f32 %v822_v29, 0.0 }
 0x232   :  { %v835_v39 = vmax.f32 %v831_v30, 0.0  ;;  %v836_v41 = vmax.f32 %v832_v31, 0.0  ;;  %v837_v15 = vmax.f32 %v833_v32, 0.0  ;;  %v838_v42 = vmax.f32 %v834_v33, 0.0 }
 0x233   :  { %v839_v26 = vmax.f32 %v799_v24, %v811_v27  ;;  %v840_v44 = vmax.f32 %v800_v1, %v812_v7  ;;  %v841_v45 = vmax.f32 %v801_v25, %v813_v28  ;;  %v842_v46 = vmax.f32 %v802_v2, %v814_v13 }
 0x234   :  { %v843_v47 = vmax.f32 %v823_v34, %v835_v39  ;;  %v844_v49 = vmax.f32 %v824_v35, %v836_v41  ;;  %v845_v50 = vmax.f32 %v825_v36, %v837_v15  ;;  %v846_v53 = vmax.f32 %v826_v37, %v838_v42 }
 0x236   :  { %v847_v54 = vmax.f32 %v839_v26, %v843_v47  ;;  %v848_v55 = vmax.f32 %v840_v44, %v844_v49  ;;  %v849_v57 = vmax.f32 %v841_v45, %v845_v50  ;;  %v850_v58 = vmax.f32 %v842_v46, %v846_v53 }
 0x238   :  { %851 = vst [vmem:[%s1404_s4] sm:$0xff] %v847_v54  ;;  %852 = vst [vmem:[%s1404_s4 + $0x8] sm:$0xff] %v848_v55 }
 0x239   :  { %853 = vst [vmem:[%s1404_s4 + $0x10] sm:$0xff] %v849_v57  ;;  %854 = vst [vmem:[%s1404_s4 + $0x18] sm:$0xff] %v850_v58 }

// kernel: cnn_forward.3
= control target key start
LH: loop header
LB: loop body
LE: loop exit
PB: predicated region body
PF: predicated region fallthrough
CT: control target
= control target key end

     0   :  { %v3827_v3 = vmov 0.0|0.0   ;;  %vm69_vm0 = vcmask 179200   ;;  %s5025_s0 = inlined_call_operand.vmem [shape: f32[4,50,150], index: 0, kind: input, shape index: {}]   ;;  %s5026_s1 = inlined_call_operand.vmem [shape: f32[150,16], index: 1, kind: input, shape index: {}]   ;;  %s5027_s2 = inlined_call_operand.vmem [shape: f32[1,16], index: 2, kind: input, shape index: {}]   ;;  %s5028_s3 = inlined_call_operand.vmem [shape: f32[1,16], index: 3, kind: input, shape index: {}]   ;;  %s5029_s4 = inlined_call_operand.vmem [shape: f32[25,16,120], index: 4, kind: input, shape index: {}]   ;;  %s5030_s5 = inlined_call_operand.vmem [shape: f32[1,120], index: 5, kind: input, shape index: {}]   ;;  %s5031_s6 = inlined_call_operand.vmem [shape: f32[120,120], index: 6, kind: input, shape index: {}]   ;;  %s5032_s7 = inlined_call_operand.vmem [shape: f32[1,120], index: 7, kind: input, shape index: {}]   ;;  %s5033_s8 = inlined_call_operand.vmem [shape: f32[120,30], index: 8, kind: input, shape index: {}]   ;;  %s5034_s9 = inlined_call_operand.vmem [shape: f32[1,30], index: 9, kind: input, shape index: {}]   ;;  %s5035_s10 = inlined_call_operand.hbm [shape: f32[2,30], index: 10, kind: output, shape index: {}]  }
   0x1   :  { %v36_v0 = vld [vmem:[%s5026_s1] sm:$0xff]  ;;  %v37_v1 = vld [vmem:[%s5026_s1 + $0x8] sm:$0xff]  ;;  %v38_v2 = vld [vmem:[%s5026_s1 + $0x10] sm:$0xff]  ;;  %3568 = vmatprep.subr.bf16.mxu0 %v3827_v3  ;;  %3595 = vmatprep.subr.bf16.mxu1 %v3827_v3 }
   0x2   :  { %v3897_v4 = vpack.c.bf16 %v37_v1, %v36_v0  ;;  %v39_v5 = vld [vmem:[%s5026_s1 + $0x18] sm:$0xff]  ;;  %v40_v7 = vld [vmem:[%s5026_s1 + $0x20] sm:$0xff]  ;;  %v41_v8 = vld [vmem:[%s5026_s1 + $0x28] sm:$0xff] }
   0x3   :  { %v3904_v6 = vpack.c.bf16 %v39_v5, %v38_v2  ;;  %v56_v9 = vld [vmem:[%s5025_s0 + $0x8] sm:$0xff]  ;;  %v3077_v10 = vld [vmem:[%s5025_s0 + $0x78] sm:$0xff]  ;;  %v3922_v11 = vpack.c.bf16 %v41_v8, %v40_v7  ;;  %v42_v12 = vld [vmem:[%s5026_s1 + $0x30] sm:$0xff] }
   0x4   :  { %3570 = vmatpush1.bf16.msra.mxu0 %v3897_v4  ;;  %3597 = vmatpush1.bf16.msra.mxu1 %v3897_v4  ;;  %v43_v13 = vld [vmem:[%s5026_s1 + $0x38] sm:$0xff]  ;;  %v44_v15 = vld [vmem:[%s5026_s1 + $0x40] sm:$0xff]  ;;  %v45_v16 = vld [vmem:[%s5026_s1 + $0x48] sm:$0xff] }
   0x5   :  { %3571 = vmatprep.subr.bf16.mxu0 %v3827_v3  ;;  %3598 = vmatprep.subr.bf16.mxu1 %v3827_v3  ;;  %v3936_v14 = vpack.c.bf16 %v43_v13, %v42_v12  ;;  %v3948_v17 = vpack.c.bf16 %v45_v16, %v44_v15  ;;  %v46_v18 = vld [vmem:[%s5026_s1 + $0x50] sm:$0xff]  ;;  %v47_v19 = vld [vmem:[%s5026_s1 + $0x58] sm:$0xff]  ;;  %v48_v21 = vld [vmem:[%s5026_s1 + $0x60] sm:$0xff] }
   0x6   :  { %3069 = vmatprep.mubr.msk.f32.mxu0 %vm69_vm0, %v56_v9  ;;  %3091 = vmatprep.mubr.msk.f32.mxu1 %vm69_vm0, %v3077_v10  ;;  %v3960_v20 = vpack.c.bf16 %v47_v19, %v46_v18  ;;  %v49_v22 = vld [vmem:[%s5026_s1 + $0x68] sm:$0xff]  ;;  %v50_v24 = vld [vmem:[%s5026_s1 + $0x70] sm:$0xff]  ;;  %v51_v25 = vld [vmem:[%s5026_s1 + $0x78] sm:$0xff] }
   0x7   :  { %v3972_v23 = vpack.c.bf16 %v49_v22, %v48_v21 }
   0x8   :  { %3573 = vmatpush1.bf16.msra.mxu0 %v3904_v6  ;;  %3600 = vmatpush1.bf16.msra.mxu1 %v3904_v6 }
   0x9   :  { %3574 = vmatprep.subr.bf16.mxu0 %v3827_v3  ;;  %3601 = vmatprep.subr.bf16.mxu1 %v3827_v3 }
   0xc   :  { %3576 = vmatpush1.bf16.msra.mxu0 %v3922_v11  ;;  %3603 = vmatpush1.bf16.msra.mxu1 %v3922_v11 }
   0xd   :  { %3577 = vmatprep.subr.bf16.mxu0 %v3827_v3  ;;  %3604 = vmatprep.subr.bf16.mxu1 %v3827_v3 }
  0x10   :  { %3579 = vmatpush1.bf16.msra.mxu0 %v3936_v14  ;;  %3606 = vmatpush1.bf16.msra.mxu1 %v3936_v14 }
  0x11   :  { %3580 = vmatprep.subr.bf16.mxu0 %v3827_v3  ;;  %3607 = vmatprep.subr.bf16.mxu1 %v3827_v3 }
  0x14   :  { %3582 = vmatpush1.bf16.msra.mxu0 %v3948_v17  ;;  %3609 = vmatpush1.bf16.msra.mxu1 %v3948_v17 }
  0x15   :  { %3583 = vmatprep.subr.bf16.mxu0 %v3827_v3  ;;  %3610 = vmatprep.subr.bf16.mxu1 %v3827_v3 }
  0x18   :  { %3585 = vmatpush1.bf16.msra.mxu0 %v3960_v20  ;;  %3612 = vmatpush1.bf16.msra.mxu1 %v3960_v20 }
  0x19   :  { %3586 = vmatprep.subr.bf16.mxu0 %v3827_v3  ;;  %3613 = vmatprep.subr.bf16.mxu1 %v3827_v3 }
  0x1a   :  { %15 = vsyncpa [#allocation3], 0  ;;  %v3984_v26 = vpack.c.bf16 %v51_v25, %v50_v24  ;;  %v52_v27 = vld [vmem:[%s5026_s1 + $0x80] sm:$0xff]  ;;  %v53_v28 = vld [vmem:[%s5026_s1 + $0x88] sm:$0xff]  ;;  %v3828_v30 = vmov 0.0   ;;  %vm91_vm1 = vcmask 1045504  }
  0x1b   :  { %v3996_v29 = vpack.c.bf16 %v53_v28, %v52_v27  ;;  %v4007_v31 = vld [vmem:[%s5026_s1 + $0x90] sm:$0x3f]  ;;  %v55_v32 = vld [vmem:[%s5025_s0] sm:$0xff]  ;;  %v58_v34 = vld [vmem:[%s5025_s0 + $0x18] sm:$0xff]  ;;  %vm3829_vm2 = vmmov 0   ;;  %vm603_vm3 = vcmask 130048  }
  0x1c   :  { %3588 = vmatpush1.bf16.msra.mxu0 %v3972_v23  ;;  %3615 = vmatpush1.bf16.msra.mxu1 %v3972_v23  ;;  %v3076_v33 = vld [vmem:[%s5025_s0 + $0x70] sm:$0xff]  ;;  %v3079_v35 = vld [vmem:[%s5025_s0 + $0x88] sm:$0xff]  ;;  %v3078_v37 = vld [vmem:[%s5025_s0 + $0x80] sm:$0xff]  ;;  %vm615_vm4 = vcmask 123904   ;;  %vm2874_vm5 = vcmask 982016   ;;  %vm3046_vm6 = vcmask 238592  }
  0x1d   :  { %3589 = vmatprep.subr.bf16.mxu0 %v3827_v3  ;;  %3616 = vmatprep.subr.bf16.mxu1 %v3827_v3  ;;  %v57_v36 = vld [vmem:[%s5025_s0 + $0x10] sm:$0xff]  ;;  %v60_v38 = vld [vmem:[%s5025_s0 + $0x28] sm:$0xff]  ;;  %v3081_v39 = vld [vmem:[%s5025_s0 + $0x98] sm:$0xff] }
  0x1e   :  { %v59_v40 = vld [vmem:[%s5025_s0 + $0x20] sm:$0xff]  ;;  %v3080_v41 = vld [vmem:[%s5025_s0 + $0x90] sm:$0xff]  ;;  %v62_v42 = vld [vmem:[%s5025_s0 + $0x38] sm:$0xff] }
  0x1f   :  { %v3083_v43 = vld [vmem:[%s5025_s0 + $0xa8] sm:$0xff]  ;;  %v61_v44 = vld [vmem:[%s5025_s0 + $0x30] sm:$0xff]  ;;  %v3082_v45 = vld [vmem:[%s5025_s0 + $0xa0] sm:$0xff] }
  0x20   :  { %3591 = vmatpush1.bf16.msra.mxu0 %v3984_v26  ;;  %3618 = vmatpush1.bf16.msra.mxu1 %v3984_v26  ;;  %v64_v46 = vld [vmem:[%s5025_s0 + $0x48] sm:$0xff]  ;;  %v3085_v47 = vld [vmem:[%s5025_s0 + $0xb8] sm:$0xff]  ;;  %v63_v48 = vld [vmem:[%s5025_s0 + $0x40] sm:$0xff] }
  0x21   :  { %3592 = vmatprep.subr.bf16.mxu0 %v3827_v3  ;;  %3619 = vmatprep.subr.bf16.mxu1 %v3827_v3  ;;  %v3084_v49 = vld [vmem:[%s5025_s0 + $0xb0] sm:$0xff]  ;;  %v66_v50 = vld [vmem:[%s5025_s0 + $0x58] sm:$0xff]  ;;  %v3087_v51 = vld [vmem:[%s5025_s0 + $0xc8] sm:$0xff] }
  0x22   :  { %v65_v52 = vld [vmem:[%s5025_s0 + $0x50] sm:$0xff]  ;;  %v3086_v53 = vld [vmem:[%s5025_s0 + $0xc0] sm:$0xff]  ;;  %v68_v54 = vld [vmem:[%s5025_s0 + $0x68] sm:$0x3] }
  0x23   :  { %v3089_v55 = vld [vmem:[%s5025_s0 + $0xd8] sm:$0x3]  ;;  %v67_v56 = vld [vmem:[%s5025_s0 + $0x60] sm:$0x3]  ;;  %v3088_v57 = vld [vmem:[%s5025_s0 + $0xd0] sm:$0x3] }
  0x24   :  { %3594 = vmatpush1.bf16.msra.mxu0 %v3996_v29  ;;  %3621 = vmatpush1.bf16.msra.mxu1 %v3996_v29  ;;  %v3099_v58 = vld [vmem:[%s5025_s0 + $0xe8] sm:$0xff]  ;;  %v3121_v59 = vld [vmem:[%s5025_s0 + $0x158] sm:$0xff]  ;;  %v3098_v60 = vld [vmem:[%s5025_s0 + $0xe0] sm:$0xff] }
  0x25   :  { %131 = vmatprep.subr.mxu0 %v3828_v30  ;;  %267 = vmatprep.subr.mxu1 %v3828_v30  ;;  %v3120_v61 = vld [vmem:[%s5025_s0 + $0x150] sm:$0xff]  ;;  %v3101_v62 = vld [vmem:[%s5025_s0 + $0xf8] sm:$0xff]  ;;  %v3123_v63 = vld [vmem:[%s5025_s0 + $0x168] sm:$0xff] }
  0x26   :  { %v3100_v0 = vld [vmem:[%s5025_s0 + $0xf0] sm:$0xff]  ;;  %v3122_v1 = vld [vmem:[%s5025_s0 + $0x160] sm:$0xff]  ;;  %v3103_v2 = vld [vmem:[%s5025_s0 + $0x108] sm:$0xff] }
  0x27   :  { %v3102_v5 = vld [vmem:[%s5025_s0 + $0x100] sm:$0xff]  ;;  %v3105_v7 = vld [vmem:[%s5025_s0 + $0x118] sm:$0xff]  ;;  %v3127_v8 = vld [vmem:[%s5025_s0 + $0x188] sm:$0xff] }
  0x28   :  { %3068 = vmatpush1.msk.msra.mxu0 %vm91_vm1, %v4007_v31  ;;  %3090 = vmatpush1.msk.msra.mxu1 %vm91_vm1, %v4007_v31  ;;  %v3104_v9 = vld [vmem:[%s5025_s0 + $0x110] sm:$0xff]  ;;  %v3126_v10 = vld [vmem:[%s5025_s0 + $0x180] sm:$0xff]  ;;  %v3129_v12 = vld [vmem:[%s5025_s0 + $0x198] sm:$0xff] }
  0x29   :  { %160 = vmatmul.mubr.f32.vlgmr.msra.gmra.mrb[0].mxu0 %v55_v32  ;;  %296 = vmatmul.mubr.f32.vlgmr.msra.gmra.mrb[0].mxu1 %v3076_v33  ;;  %v3106_v13 = vld [vmem:[%s5025_s0 + $0x120] sm:$0xff]  ;;  %v3109_v15 = vld [vmem:[%s5025_s0 + $0x138] sm:$0xff]  ;;  %v3131_v16 = vld [vmem:[%s5025_s0 + $0x1a8] sm:$0xff] }
  0x2a   :  { %3622 = vmatprep.subr.bf16.mxu0 %v3827_v3  ;;  %3649 = vmatprep.subr.bf16.mxu1 %v3827_v3  ;;  %v3130_v18 = vld [vmem:[%s5025_s0 + $0x1a0] sm:$0xff]  ;;  %v3111_v19 = vld [vmem:[%s5025_s0 + $0x148] sm:$0x3]  ;;  %v3132_v22 = vld [vmem:[%s5025_s0 + $0x1b0] sm:$0x3] }
  0x2b   :  { %3624 = vmatpush1.bf16.msra.mxu0 %v3897_v4  ;;  %3651 = vmatpush1.bf16.msra.mxu1 %v3897_v4  ;;  %v3125_v4 = vld [vmem:[%s5025_s0 + $0x178] sm:$0xff]  ;;  %v3110_v21 = vld [vmem:[%s5025_s0 + $0x140] sm:$0x3]  ;;  %v922_v24 = vld [vmem:[%s5029_s4 + $0x8] sm:$0xff] }
  0x2c   :  { %3070 = vmatprep.mubr.msk.f32.mxu0 %vm69_vm0, %v58_v34  ;;  %3092 = vmatprep.mubr.msk.f32.mxu1 %vm69_vm0, %v3079_v35  ;;  %v3143_v27 = vld [vmem:[%s5029_s4 + $0x18] sm:$0xff] }
  0x2d   :  { %165 = vmatmul.mubr.f32.gmra.mrb[2].mxu0 %v57_v36  ;;  %301 = vmatmul.mubr.f32.gmra.mrb[2].mxu1 %v3078_v37 }
  0x2e   :  { %3625 = vmatprep.subr.bf16.mxu0 %v3827_v3  ;;  %3652 = vmatprep.subr.bf16.mxu1 %v3827_v3 }
  0x2f   :  { %3627 = vmatpush1.bf16.msra.mxu0 %v3904_v6  ;;  %3654 = vmatpush1.bf16.msra.mxu1 %v3904_v6  ;;  %v3124_v6 = vld [vmem:[%s5025_s0 + $0x170] sm:$0xff] }
  0x30   :  { %3071 = vmatprep.mubr.msk.f32.mxu0 %vm69_vm0, %v60_v38  ;;  %3093 = vmatprep.mubr.msk.f32.mxu1 %vm69_vm0, %v3081_v39 }
  0x31   :  { %170 = vmatmul.mubr.f32.gmra.mrb[4].mxu0 %v59_v40  ;;  %306 = vmatmul.mubr.f32.gmra.mrb[4].mxu1 %v3080_v41 }
  0x32   :  { %3628 = vmatprep.subr.bf16.mxu0 %v3827_v3  ;;  %3655 = vmatprep.subr.bf16.mxu1 %v3827_v3 }
  0x33   :  { %3630 = vmatpush1.bf16.msra.mxu0 %v3922_v11  ;;  %3657 = vmatpush1.bf16.msra.mxu1 %v3922_v11  ;;  %v3107_v11 = vld [vmem:[%s5025_s0 + $0x128] sm:$0xff] }
  0x34   :  { %3072 = vmatprep.mubr.msk.f32.mxu0 %vm69_vm0, %v62_v42  ;;  %3094 = vmatprep.mubr.msk.f32.mxu1 %vm69_vm0, %v3083_v43 }
  0x35   :  { %175 = vmatmul.mubr.f32.gmra.mrb[6].mxu0 %v61_v44  ;;  %311 = vmatmul.mubr.f32.gmra.mrb[6].mxu1 %v3082_v45 }
  0x36   :  { %3631 = vmatprep.subr.bf16.mxu0 %v3827_v3  ;;  %3658 = vmatprep.subr.bf16.mxu1 %v3827_v3 }
  0x37   :  { %3633 = vmatpush1.bf16.msra.mxu0 %v3936_v14  ;;  %3660 = vmatpush1.bf16.msra.mxu1 %v3936_v14  ;;  %v3128_v14 = vld [vmem:[%s5025_s0 + $0x190] sm:$0xff] }
  0x38   :  { %3073 = vmatprep.mubr.msk.f32.mxu0 %vm69_vm0, %v64_v46  ;;  %3095 = vmatprep.mubr.msk.f32.mxu1 %vm69_vm0, %v3085_v47 }
  0x39   :  { %180 = vmatmul.mubr.f32.gmra.mrb[8].mxu0 %v63_v48  ;;  %316 = vmatmul.mubr.f32.gmra.mrb[8].mxu1 %v3084_v49 }
  0x3a   :  { %3634 = vmatprep.subr.bf16.mxu0 %v3827_v3  ;;  %3661 = vmatprep.subr.bf16.mxu1 %v3827_v3 }
  0x3b   :  { %3636 = vmatpush1.bf16.msra.mxu0 %v3948_v17  ;;  %3663 = vmatpush1.bf16.msra.mxu1 %v3948_v17  ;;  %v3108_v17 = vld [vmem:[%s5025_s0 + $0x130] sm:$0xff] }
  0x3c   :  { %3074 = vmatprep.mubr.msk.f32.mxu0 %vm69_vm0, %v66_v50  ;;  %3096 = vmatprep.mubr.msk.f32.mxu1 %vm69_vm0, %v3087_v51 }
  0x3d   :  { %185 = vmatmul.mubr.f32.gmra.mrb[10].mxu0 %v65_v52  ;;  %321 = vmatmul.mubr.f32.gmra.mrb[10].mxu1 %v3086_v53 }
  0x3e   :  { %3637 = vmatprep.subr.bf16.mxu0 %v3827_v3  ;;  %3664 = vmatprep.subr.bf16.mxu1 %v3827_v3 }
  0x3f   :  { %3639 = vmatpush1.bf16.msra.mxu0 %v3960_v20  ;;  %3666 = vmatpush1.bf16.msra.mxu1 %v3960_v20  ;;  %v3133_v20 = vld [vmem:[%s5025_s0 + $0x1b8] sm:$0x3] }
  0x40   :  { %3075 = vmatprep.mubr.msk.f32.mxu0 %vm69_vm0, %v68_v54  ;;  %3097 = vmatprep.mubr.msk.f32.mxu1 %vm69_vm0, %v3089_v55 }
  0x41   :  { %190 = vmatmul.mubr.f32.gmra.mrb[12].mxu0 %v67_v56  ;;  %326 = vmatmul.mubr.f32.gmra.mrb[12].mxu1 %v3088_v57 }
  0x42   :  { %3640 = vmatprep.subr.bf16.mxu0 %v3827_v3  ;;  %3667 = vmatprep.subr.bf16.mxu1 %v3827_v3 }
  0x43   :  { %3642 = vmatpush1.bf16.msra.mxu0 %v3972_v23  ;;  %3669 = vmatpush1.bf16.msra.mxu1 %v3972_v23  ;;  %v921_v23 = vld [vmem:[%s5029_s4] sm:$0xff] }
  0x44   :  { %3643 = vmatprep.subr.bf16.mxu0 %v3827_v3  ;;  %3670 = vmatprep.subr.bf16.mxu1 %v3827_v3  ;;  %v3680_v25 = vpack.c.bf16 %v922_v24, %v921_v23 }
  0x45   :  { %3113 = vmatprep.mubr.msk.f32.mxu0 %vm69_vm0, %v3099_v58  ;;  %3135 = vmatprep.mubr.msk.f32.mxu1 %vm69_vm0, %v3121_v59 }
  0x47   :  { %3645 = vmatpush1.bf16.msra.mxu0 %v3984_v26  ;;  %3672 = vmatpush1.bf16.msra.mxu1 %v3984_v26  ;;  %v3142_v26 = vld [vmem:[%s5029_s4 + $0x10] sm:$0xff] }
  0x48   :  { %3646 = vmatprep.subr.bf16.mxu0 %v3827_v3  ;;  %3673 = vmatprep.subr.bf16.mxu1 %v3827_v3  ;;  %v3677_v28 = vpack.c.bf16 %v3143_v27, %v3142_v26 }
  0x4b   :  { %3648 = vmatpush1.bf16.msra.mxu0 %v3996_v29  ;;  %3675 = vmatpush1.bf16.msra.mxu1 %v3996_v29 }
  0x4c   :  { %403 = vmatprep.subr.mxu0 %v3828_v30  ;;  %539 = vmatprep.subr.mxu1 %v3828_v30 }
  0x4f   :  { %3112 = vmatpush1.msk.msra.mxu0 %vm91_vm1, %v4007_v31  ;;  %3134 = vmatpush1.msk.msra.mxu1 %vm91_vm1, %v4007_v31 }
  0x50   :  { %432 = vmatmul.mubr.f32.vlgmr.msra.gmra.mrb[14].mxu0 %v3098_v60  ;;  %568 = vmatmul.mubr.f32.vlgmr.msra.gmra.mrb[14].mxu1 %v3120_v61 }
  0x51   :  { %3114 = vmatprep.mubr.msk.f32.mxu0 %vm69_vm0, %v3101_v62  ;;  %3136 = vmatprep.mubr.msk.f32.mxu1 %vm69_vm0, %v3123_v63 }
  0x52   :  { %3676 = vmatprep.subr.bf16.mxu0 %v3827_v3  ;;  %3679 = vmatprep.subr.bf16.mxu1 %v3827_v3 }
  0x53   :  { %3681 = vmatpush3.bf16.msra.mxu1 %v3680_v25  ;;  %3678 = vmatpush3.bf16.msra.mxu0 %v3677_v28 }
  0x54   :  { %437 = vmatmul.mubr.f32.gmra.mrb[16].mxu0 %v3100_v0  ;;  %573 = vmatmul.mubr.f32.gmra.mrb[16].mxu1 %v3122_v1 }
  0x55   :  { %3115 = vmatprep.mubr.msk.f32.mxu0 %vm69_vm0, %v3103_v2  ;;  %3137 = vmatprep.mubr.msk.f32.mxu1 %vm69_vm0, %v3125_v4 }
  0x56   :  { %3685 = vmatprep.subr.bf16.mxu1 %v3827_v3  ;;  %3682 = vmatprep.subr.bf16.mxu0 %v3827_v3 }
  0x58   :  { %442 = vmatmul.mubr.f32.gmra.mrb[18].mxu0 %v3102_v5  ;;  %578 = vmatmul.mubr.f32.gmra.mrb[18].mxu1 %v3124_v6 }
  0x59   :  { %3116 = vmatprep.mubr.msk.f32.mxu0 %vm69_vm0, %v3105_v7  ;;  %3138 = vmatprep.mubr.msk.f32.mxu1 %vm69_vm0, %v3127_v8 }
  0x5c   :  { %447 = vmatmul.mubr.f32.gmra.mrb[20].mxu0 %v3104_v9  ;;  %583 = vmatmul.mubr.f32.gmra.mrb[20].mxu1 %v3126_v10 }
  0x5d   :  { %3117 = vmatprep.mubr.msk.f32.mxu0 %vm69_vm0, %v3107_v11  ;;  %3139 = vmatprep.mubr.msk.f32.mxu1 %vm69_vm0, %v3129_v12 }
  0x60   :  { %452 = vmatmul.mubr.f32.gmra.mrb[22].mxu0 %v3106_v13  ;;  %588 = vmatmul.mubr.f32.gmra.mrb[22].mxu1 %v3128_v14 }
  0x61   :  { %3118 = vmatprep.mubr.msk.f32.mxu0 %vm69_vm0, %v3109_v15  ;;  %3140 = vmatprep.mubr.msk.f32.mxu1 %vm69_vm0, %v3131_v16 }
  0x64   :  { %457 = vmatmul.mubr.f32.gmra.mrb[24].mxu0 %v3108_v17  ;;  %593 = vmatmul.mubr.f32.gmra.mrb[24].mxu1 %v3130_v18 }
  0x65   :  { %3119 = vmatprep.mubr.msk.f32.mxu0 %vm69_vm0, %v3111_v19  ;;  %3141 = vmatprep.mubr.msk.f32.mxu1 %vm69_vm0, %v3133_v20 }
  0x68   :  { %462 = vmatmul.mubr.f32.gmra.mrb[26].mxu0 %v3110_v21  ;;  %598 = vmatmul.mubr.f32.gmra.mrb[26].mxu1 %v3132_v22 }
  0x69   :  { %3338 = vmatprep.mubr.msk.f32.mxu1 %vm3829_vm2, %v3828_v30  ;;  %3331 = vmatprep.mubr.msk.f32.mxu0 %vm3829_vm2, %v3828_v30 }
  0xfc   :  { %v4263_v29 = vpop.f32.mrb[0].mxu0  ;;  %v4265_v31 = vpop.f32.mrb[0].mxu1 }
  0xfd   :  { %v163_v32 = vpop.f32.mrb[1].mxu0  ;;  %v712_v33 = vmul.f32 %v4265_v31, %v4265_v31  ;;  %v299_v34 = vpop.f32.mrb[1].mxu1  ;;  %v685_v35 = vmul.f32 %v4263_v29, %v4263_v29  ;;  %v625_v36 = vsel %vm603_vm3, %v4265_v31, 0.0  ;;  %v604_v37 = vsel %vm603_vm3, %v4263_v29, 0.0 }
  0xff   :  { %v719_v38 = vsel %vm603_vm3, %v712_v33, 0.0  ;;  %v692_v49 = vsel %vm603_vm3, %v685_v35, 0.0 }
 0x100   :  { %v4276_v39 = vpop.f32.mrb[2].mxu0  ;;  %v4278_v40 = vpop.f32.mrb[2].mxu1 }
 0x101   :  { %v605_v41 = vsel %vm603_vm3, %v4276_v39, 0.0  ;;  %v686_v42 = vmul.f32 %v4276_v39, %v4276_v39  ;;  %v626_v43 = vsel %vm603_vm3, %v4278_v40, 0.0  ;;  %v713_v44 = vmul.f32 %v4278_v40, %v4278_v40  ;;  %v168_v45 = vpop.f32.mrb[3].mxu0  ;;  %v304_v46 = vpop.f32.mrb[3].mxu1 }
 0x102   :  { %v606_v47 = vadd.f32 %v605_v41, %v604_v37  ;;  %v627_v48 = vadd.f32 %v626_v43, %v625_v36 }
 0x103   :  { %v693_v50 = vsel %vm603_vm3, %v686_v42, 0.0  ;;  %v720_v51 = vsel %vm603_vm3, %v713_v44, 0.0 }
 0x104   :  { %v694_v52 = vadd.f32 %v693_v50, %v692_v49  ;;  %v721_v53 = vadd.f32 %v720_v51, %v719_v38  ;;  %v4291_v54 = vpop.f32.mrb[4].mxu0  ;;  %v4293_v55 = vpop.f32.mrb[4].mxu1 }
 0x105   :  { %v607_v56 = vsel %vm603_vm3, %v4291_v54, 0.0  ;;  %v687_v57 = vmul.f32 %v4291_v54, %v4291_v54  ;;  %v628_v58 = vsel %vm603_vm3, %v4293_v55, 0.0  ;;  %v714_v59 = vmul.f32 %v4293_v55, %v4293_v55  ;;  %v173_v60 = vpop.f32.mrb[5].mxu0  ;;  %v309_v61 = vpop.f32.mrb[5].mxu1 }
 0x106   :  { %v608_v62 = vadd.f32 %v607_v56, %v606_v47  ;;  %v629_v63 = vadd.f32 %v628_v58, %v627_v48 }
 0x107   :  { %v695_v0 = vsel %vm603_vm3, %v687_v57, 0.0  ;;  %v722_v1 = vsel %vm603_vm3, %v714_v59, 0.0 }
 0x108   :  { %v696_v2 = vadd.f32 %v695_v0, %v694_v52  ;;  %v723_v4 = vadd.f32 %v722_v1, %v721_v53  ;;  %v4305_v5 = vpop.f32.mrb[6].mxu0  ;;  %v4307_v6 = vpop.f32.mrb[6].mxu1 }
 0x109   :  { %v609_v7 = vsel %vm603_vm3, %v4305_v5, 0.0  ;;  %v688_v8 = vmul.f32 %v4305_v5, %v4305_v5  ;;  %v630_v9 = vsel %vm603_vm3, %v4307_v6, 0.0  ;;  %v715_v10 = vmul.f32 %v4307_v6, %v4307_v6  ;;  %v178_v11 = vpop.f32.mrb[7].mxu0  ;;  %v314_v12 = vpop.f32.mrb[7].mxu1 }
 0x10a   :  { %v610_v13 = vadd.f32 %v609_v7, %v608_v62  ;;  %v631_v14 = vadd.f32 %v630_v9, %v629_v63 }
 0x10b   :  { %v697_v15 = vsel %vm603_vm3, %v688_v8, 0.0  ;;  %v724_v16 = vsel %vm603_vm3, %v715_v10, 0.0 }
 0x10c   :  { %v698_v17 = vadd.f32 %v697_v15, %v696_v2  ;;  %v725_v18 = vadd.f32 %v724_v16, %v723_v4  ;;  %v4319_v19 = vpop.f32.mrb[8].mxu0  ;;  %v4321_v20 = vpop.f32.mrb[8].mxu1 }
 0x10d   :  { %v611_v21 = vsel %vm603_vm3, %v4319_v19, 0.0  ;;  %v689_v22 = vmul.f32 %v4319_v19, %v4319_v19  ;;  %v632_v23 = vsel %vm603_vm3, %v4321_v20, 0.0  ;;  %v716_v24 = vmul.f32 %v4321_v20, %v4321_v20  ;;  %v183_v25 = vpop.f32.mrb[9].mxu0  ;;  %v319_v26 = vpop.f32.mrb[9].mxu1 }
 0x10e   :  { %v612_v27 = vadd.f32 %v611_v21, %v610_v13  ;;  %v633_v28 = vadd.f32 %v632_v23, %v631_v14 }
 0x10f   :  { %v699_v32 = vsel %vm603_vm3, %v689_v22, 0.0  ;;  %v726_v33 = vsel %vm603_vm3, %v716_v24, 0.0 }
 0x110   :  { %v700_v34 = vadd.f32 %v699_v32, %v698_v17  ;;  %v727_v35 = vadd.f32 %v726_v33, %v725_v18  ;;  %v4333_v36 = vpop.f32.mrb[10].mxu0  ;;  %v4335_v37 = vpop.f32.mrb[10].mxu1 }
 0x111   :  { %v613_v38 = vsel %vm603_vm3, %v4333_v36, 0.0  ;;  %v690_v41 = vmul.f32 %v4333_v36, %v4333_v36  ;;  %v634_v42 = vsel %vm603_vm3, %v4335_v37, 0.0  ;;  %v717_v43 = vmul.f32 %v4335_v37, %v4335_v37  ;;  %v188_v44 = vpop.f32.mrb[11].mxu0  ;;  %v324_v45 = vpop.f32.mrb[11].mxu1 }
 0x112   :  { %v614_v46 = vadd.f32 %v613_v38, %v612_v27  ;;  %v635_v47 = vadd.f32 %v634_v42, %v633_v28 }
 0x113   :  { %v701_v48 = vsel %vm603_vm3, %v690_v41, 0.0  ;;  %v728_v49 = vsel %vm603_vm3, %v717_v43, 0.0 }
 0x114   :  { %v702_v50 = vadd.f32 %v701_v48, %v700_v34  ;;  %v729_v51 = vadd.f32 %v728_v49, %v727_v35  ;;  %v4347_v52 = vpop.f32.mrb[12].mxu0  ;;  %v4349_v53 = vpop.f32.mrb[12].mxu1 }
 0x115   :  { %v616_v56 = vsel %vm615_vm4, %v4347_v52, 0.0  ;;  %v691_v57 = vmul.f32 %v4347_v52, %v4347_v52  ;;  %v636_v58 = vsel %vm615_vm4, %v4349_v53, 0.0  ;;  %v718_v59 = vmul.f32 %v4349_v53, %v4349_v53  ;;  %v193_v60 = vpop.f32.mrb[13].mxu0  ;;  %v329_v61 = vpop.f32.mrb[13].mxu1 }
 0x116   :  { %v617_v62 = vadd.f32 %v616_v56, %v614_v46  ;;  %v637_v63 = vadd.f32 %v636_v58, %v635_v47 }
 0x117   :  { %v703_v0 = vsel %vm615_vm4, %v691_v57, 0.0  ;;  %v730_v1 = vsel %vm615_vm4, %v718_v59, 0.0 }
 0x118   :  { %v618_v2 = vrot.slane %v617_v62, 4  ;;  %v704_v4 = vadd.f32 %v703_v0, %v702_v50  ;;  %v638_v7 = vrot.slane %v637_v63, 4  ;;  %v731_v8 = vadd.f32 %v730_v1, %v729_v51 }
 0x11a   :  { %v619_v9 = vadd.f32 %v618_v2, %v617_v62  ;;  %v705_v10 = vrot.slane %v704_v4, 4  ;;  %v639_v11 = vadd.f32 %v638_v7, %v637_v63  ;;  %v732_v12 = vrot.slane %v731_v8, 4 }
 0x11c   :  { %v620_v13 = vrot.slane %v619_v9, 2  ;;  %v706_v14 = vadd.f32 %v705_v10, %v704_v4  ;;  %v640_v15 = vrot.slane %v639_v11, 2  ;;  %v733_v16 = vadd.f32 %v732_v12, %v731_v8 }
 0x11e   :  { %v621_v17 = vadd.f32 %v620_v13, %v619_v9  ;;  %v707_v18 = vrot.slane %v706_v14, 2  ;;  %v641_v21 = vadd.f32 %v640_v15, %v639_v11  ;;  %v734_v22 = vrot.slane %v733_v16, 2 }
 0x120   :  { %v622_v23 = vrot.slane %v621_v17, 1  ;;  %v708_v24 = vadd.f32 %v707_v18, %v706_v14  ;;  %v642_v25 = vrot.slane %v641_v21, 1  ;;  %v735_v26 = vadd.f32 %v734_v22, %v733_v16 }
 0x122   :  { %v623_v27 = vadd.f32 %v622_v23, %v621_v17  ;;  %v709_v28 = vrot.slane %v708_v24, 1  ;;  %v643_v32 = vadd.f32 %v642_v25, %v641_v21  ;;  %v736_v33 = vrot.slane %v735_v26, 1 }
 0x123   :  { %v4361_v34 = vpop.f32.mrb[14].mxu0  ;;  %v4363_v35 = vpop.f32.mrb[14].mxu1 }
 0x124   :  { %v710_v38 = vadd.f32 %v709_v28, %v708_v24  ;;  %v4365_v41 = vadd.f32 %v643_v32, %v623_v27  ;;  %v737_v42 = vadd.f32 %v736_v33, %v735_v26  ;;  %v435_v43 = vpop.f32.mrb[15].mxu0  ;;  %v571_v44 = vpop.f32.mrb[15].mxu1  ;;  %v739_v46 = vmul.f32 %v4361_v34, %v4361_v34 }
 0x125   :  { %v766_v47 = vmul.f32 %v4363_v35, %v4363_v35  ;;  %v645_v48 = vsel %vm603_vm3, %v4361_v34, 0.0  ;;  %v665_v49 = vsel %vm603_vm3, %v4363_v35, 0.0 }
 0x126   :  { %v4367_v45 = vadd.f32 %v737_v42, %v710_v38  ;;  %v746_v0 = vsel %vm603_vm3, %v739_v46, 0.0 }
 0x127   :  { %v4377_v50 = vpop.f32.mrb[16].mxu0  ;;  %v4379_v51 = vpop.f32.mrb[16].mxu1  ;;  %v773_v1 = vsel %vm603_vm3, %v766_v47, 0.0 }
 0x128   :  { %v646_v56 = vsel %vm603_vm3, %v4377_v50, 0.0  ;;  %v740_v57 = vmul.f32 %v4377_v50, %v4377_v50  ;;  %v666_v58 = vsel %vm603_vm3, %v4379_v51, 0.0  ;;  %v767_v59 = vmul.f32 %v4379_v51, %v4379_v51  ;;  %v440_v60 = vpop.f32.mrb[17].mxu0  ;;  %v576_v61 = vpop.f32.mrb[17].mxu1 }
 0x129   :  { %v647_v62 = vadd.f32 %v646_v56, %v645_v48  ;;  %v667_v63 = vadd.f32 %v666_v58, %v665_v49 }
 0x12a   :  { %v747_v2 = vsel %vm603_vm3, %v740_v57, 0.0  ;;  %v774_v4 = vsel %vm603_vm3, %v767_v59, 0.0 }
 0x12b   :  { %v748_v7 = vadd.f32 %v747_v2, %v746_v0  ;;  %v775_v8 = vadd.f32 %v774_v4, %v773_v1  ;;  %v4393_v9 = vpop.f32.mrb[18].mxu0  ;;  %v4395_v10 = vpop.f32.mrb[18].mxu1 }
 0x12c   :  { %v648_v11 = vsel %vm603_vm3, %v4393_v9, 0.0  ;;  %v741_v12 = vmul.f32 %v4393_v9, %v4393_v9  ;;  %v668_v13 = vsel %vm603_vm3, %v4395_v10, 0.0  ;;  %v768_v14 = vmul.f32 %v4395_v10, %v4395_v10  ;;  %v445_v15 = vpop.f32.mrb[19].mxu0  ;;  %v581_v16 = vpop.f32.mrb[19].mxu1 }
 0x12d   :  { %v649_v17 = vadd.f32 %v648_v11, %v647_v62  ;;  %v669_v18 = vadd.f32 %v668_v13, %v667_v63 }
 0x12e   :  { %v749_v21 = vsel %vm603_vm3, %v741_v12, 0.0  ;;  %v776_v22 = vsel %vm603_vm3, %v768_v14, 0.0 }
 0x12f   :  { %v750_v23 = vadd.f32 %v749_v21, %v748_v7  ;;  %v777_v24 = vadd.f32 %v776_v22, %v775_v8  ;;  %v4407_v25 = vpop.f32.mrb[20].mxu0  ;;  %v4409_v26 = vpop.f32.mrb[20].mxu1 }
 0x130   :  { %v650_v27 = vsel %vm603_vm3, %v4407_v25, 0.0  ;;  %v742_v28 = vmul.f32 %v4407_v25, %v4407_v25  ;;  %v670_v32 = vsel %vm603_vm3, %v4409_v26, 0.0  ;;  %v769_v33 = vmul.f32 %v4409_v26, %v4409_v26  ;;  %v450_v38 = vpop.f32.mrb[21].mxu0  ;;  %v586_v42 = vpop.f32.mrb[21].mxu1 }
 0x131   :  { %v651_v43 = vadd.f32 %v650_v27, %v649_v17  ;;  %v671_v44 = vadd.f32 %v670_v32, %v669_v18 }
 0x132   :  { %v751_v46 = vsel %vm603_vm3, %v742_v28, 0.0  ;;  %v778_v47 = vsel %vm603_vm3, %v769_v33, 0.0 }
 0x133   :  { %v752_v48 = vadd.f32 %v751_v46, %v750_v23  ;;  %v779_v49 = vadd.f32 %v778_v47, %v777_v24  ;;  %v4421_v56 = vpop.f32.mrb[22].mxu0  ;;  %v4423_v57 = vpop.f32.mrb[22].mxu1 }
 0x134   :  { %v652_v58 = vsel %vm603_vm3, %v4421_v56, 0.0  ;;  %v743_v59 = vmul.f32 %v4421_v56, %v4421_v56  ;;  %v672_v60 = vsel %vm603_vm3, %v4423_v57, 0.0  ;;  %v770_v61 = vmul.f32 %v4423_v57, %v4423_v57  ;;  %v455_v62 = vpop.f32.mrb[23].mxu0  ;;  %v591_v63 = vpop.f32.mrb[23].mxu1 }
 0x135   :  { %v653_v0 = vadd.f32 %v652_v58, %v651_v43  ;;  %v673_v1 = vadd.f32 %v672_v60, %v671_v44 }
 0x136   :  { %v753_v2 = vsel %vm603_vm3, %v743_v59, 0.0  ;;  %v780_v4 = vsel %vm603_vm3, %v770_v61, 0.0 }
 0x137   :  { %v754_v7 = vadd.f32 %v753_v2, %v752_v48  ;;  %v781_v8 = vadd.f32 %v780_v4, %v779_v49  ;;  %v4435_v11 = vpop.f32.mrb[24].mxu0  ;;  %v4437_v12 = vpop.f32.mrb[24].mxu1 }
 0x138   :  { %v654_v13 = vsel %vm603_vm3, %v4435_v11, 0.0  ;;  %v744_v14 = vmul.f32 %v4435_v11, %v4435_v11  ;;  %v674_v15 = vsel %vm603_vm3, %v4437_v12, 0.0  ;;  %v771_v16 = vmul.f32 %v4437_v12, %v4437_v12  ;;  %v460_v17 = vpop.f32.mrb[25].mxu0  ;;  %v596_v18 = vpop.f32.mrb[25].mxu1 }
 0x139   :  { %v655_v21 = vadd.f32 %v654_v13, %v653_v0  ;;  %v675_v22 = vadd.f32 %v674_v15, %v673_v1 }
 0x13a   :  { %v755_v23 = vsel %vm603_vm3, %v744_v14, 0.0  ;;  %v782_v24 = vsel %vm603_vm3, %v771_v16, 0.0 }
 0x13b   :  { %v756_v27 = vadd.f32 %v755_v23, %v754_v7  ;;  %v783_v28 = vadd.f32 %v782_v24, %v781_v8  ;;  %v4449_v32 = vpop.f32.mrb[26].mxu0  ;;  %v4451_v33 = vpop.f32.mrb[26].mxu1 }
 0x13c   :  { %v656_v38 = vsel %vm615_vm4, %v4449_v32, 0.0  ;;  %v745_v42 = vmul.f32 %v4449_v32, %v4449_v32  ;;  %v676_v43 = vsel %vm615_vm4, %v4451_v33, 0.0  ;;  %v772_v44 = vmul.f32 %v4451_v33, %v4451_v33  ;;  %v465_v46 = vpop.f32.mrb[27].mxu0  ;;  %v601_v47 = vpop.f32.mrb[27].mxu1 }
 0x13d   :  { %v657_v48 = vadd.f32 %v656_v38, %v655_v21  ;;  %v677_v49 = vadd.f32 %v676_v43, %v675_v22 }
 0x13e   :  { %v757_v58 = vsel %vm615_vm4, %v745_v42, 0.0  ;;  %v784_v59 = vsel %vm615_vm4, %v772_v44, 0.0 }
 0x13f   :  { %v658_v60 = vrot.slane %v657_v48, 4  ;;  %v758_v61 = vadd.f32 %v757_v58, %v756_v27  ;;  %v678_v62 = vrot.slane %v677_v49, 4  ;;  %v785_v63 = vadd.f32 %v784_v59, %v783_v28 }
 0x141   :  { %v659_v0 = vadd.f32 %v658_v60, %v657_v48  ;;  %v759_v1 = vrot.slane %v758_v61, 4  ;;  %v679_v2 = vadd.f32 %v678_v62, %v677_v49  ;;  %v786_v4 = vrot.slane %v785_v63, 4 }
 0x143   :  { %v660_v7 = vrot.slane %v659_v0, 2  ;;  %v760_v8 = vadd.f32 %v759_v1, %v758_v61  ;;  %v680_v13 = vrot.slane %v679_v2, 2  ;;  %v787_v14 = vadd.f32 %v786_v4, %v785_v63  ;;  %v797_v1 = vld [vmem:[%s5027_s2] sm:$0x1] }
 0x144   :  { %v805_v63 = vlaneseq }
 0x145   :  { %v661_v15 = vadd.f32 %v660_v7, %v659_v0  ;;  %v761_v16 = vrot.slane %v760_v8, 2  ;;  %v681_v17 = vadd.f32 %v680_v13, %v679_v2  ;;  %v788_v18 = vrot.slane %v787_v14, 2  ;;  %v4476_v2 = vld [vmem:[%s5029_s4 + $0x38] sm:$0xff]  ;;  %v4481_v7 = vld [vmem:[%s5029_s4 + $0x20] sm:$0xff]  ;;  %v4491_v13 = vld [vmem:[%s5029_s4 + $0x50] sm:$0xff] }
 0x146   :  { %v806_v0 = vshrl.u32 %v805_v63, 7 }
 0x147   :  { %v662_v21 = vrot.slane %v661_v15, 1  ;;  %v762_v22 = vadd.f32 %v761_v16, %v760_v8  ;;  %v682_v23 = vrot.slane %v681_v17, 1  ;;  %v789_v24 = vadd.f32 %v788_v18, %v787_v14  ;;  %v4486_v8 = vld [vmem:[%s5029_s4 + $0x28] sm:$0xff]  ;;  %v4501_v16 = vld [vmem:[%s5029_s4 + $0x40] sm:$0xff] }
 0x148   :  { %v801_v18 = vld [vmem:[%s5028_s3] sm:$0x1] }
 0x149   :  { %v663_v38 = vadd.f32 %v662_v21, %v661_v15  ;;  %v763_v27 = vrot.slane %v762_v22, 1  ;;  %v790_v42 = vrot.slane %v789_v24, 1  ;;  %v683_v44 = vadd.f32 %v682_v23, %v681_v17  ;;  %v4496_v15 = vld [vmem:[%s5029_s4 + $0x58] sm:$0xff]  ;;  %v4506_v17 = vld [vmem:[%s5029_s4 + $0x48] sm:$0xff] }
 0x14b   :  { %v664_v28 = vadd.f32 %v663_v38, %v4365_v41  ;;  %v764_v43 = vadd.f32 %v763_v27, %v762_v22  ;;  %v791_v48 = vadd.f32 %v790_v42, %v789_v24  ;;  %v807_v41 = vsub.s32 0, %v806_v0 }
 0x14c   :  { %v3683_v24 = vpack.c.bf16 %v4486_v8, %v4481_v7  ;;  %v3692_v38 = vpack.c.bf16 %v4496_v15, %v4491_v13  ;;  %v3689_v27 = vpack.c.bf16 %v4506_v17, %v4501_v16  ;;  %v4647_v8 = vld [vmem:[%s5029_s4 + $0x80] sm:$0xff]  ;;  %v3165_v13 = vld [vmem:[%s5029_s4 + $0x88] sm:$0xff]  ;;  %v4660_v15 = vld [vmem:[%s5029_s4 + $0xb0] sm:$0xff] }
 0x14d   :  { %v765_v46 = vadd.f32 %v764_v43, %v4367_v45  ;;  %v684_v47 = vadd.f32 %v683_v44, %v664_v28  ;;  %v4471_v45 = vld [vmem:[%s5029_s4 + $0x30] sm:$0xff] }
 0x14e   :  { %v3686_v23 = vpack.c.bf16 %v4476_v2, %v4471_v45 }
 0x14f   :  { %v792_v49 = vadd.f32 %v791_v48, %v765_v46  ;;  %v793_v58 = vmul.f32 0.005, %v684_v47 }
 0x151   :  { %v794_v59 = vmul.f32 0.005, %v792_v49  ;;  %v795_v60 = vmul.f32 %v793_v58, %v793_v58 }
 0x153   :  { %v796_v61 = vsub.f32 %v794_v59, %v795_v60 }
 0x155   :  { %v798_v62 = vadd.f32 1e-05, %v796_v61 }
 0x157   :  { %3797 = vrsqrt.f32 %v798_v62 }
 0x161   :  { %v3798_v4 = vpop.eup %3797 }
 0x162   :  { %v800_v14 = vmul.f32 %v3798_v4, %v797_v1 }
 0x164   :  { %v802_v21 = vmul.f32 %v800_v14, %v793_v58  ;;  %v4511_v22 = vrot.slane %v800_v14, %v807_v41 }
 0x166   :  { %v803_v42 = vsub.f32 %v801_v18, %v802_v21  ;;  %v816_v28 = vmul.f32 %v4511_v22, %v4347_v52  ;;  %v843_v43 = vmul.f32 %v4511_v22, %v4349_v53  ;;  %v864_v44 = vmul.f32 %v4511_v22, %v4449_v32 }
 0x167   :  { %v885_v46 = vmul.f32 %v4511_v22, %v4451_v33  ;;  %v810_v47 = vmul.f32 %v4511_v22, %v4263_v29  ;;  %v837_v48 = vmul.f32 %v4511_v22, %v4265_v31  ;;  %v858_v49 = vmul.f32 %v4511_v22, %v4361_v34 }
 0x168   :  { %v4535_v58 = vrot.slane %v803_v42, %v807_v41  ;;  %v879_v52 = vmul.f32 %v4511_v22, %v4363_v35  ;;  %v811_v53 = vmul.f32 %v4511_v22, %v4276_v39  ;;  %v838_v32 = vmul.f32 %v4511_v22, %v4278_v40 }
 0x169   :  { %v859_v29 = vmul.f32 %v4511_v22, %v4377_v50  ;;  %v880_v31 = vmul.f32 %v4511_v22, %v4379_v51  ;;  %v812_v34 = vmul.f32 %v4511_v22, %v4291_v54  ;;  %v839_v33 = vmul.f32 %v4511_v22, %v4293_v55 }
 0x16a   :  { %v829_v35 = vadd.f32 %v4535_v58, %v816_v28  ;;  %v850_v59 = vadd.f32 %v843_v43, %v4535_v58  ;;  %v871_v39 = vadd.f32 %v864_v44, %v4535_v58  ;;  %v892_v40 = vadd.f32 %v885_v46, %v4535_v58 }
 0x16b   :  { %v823_v60 = vadd.f32 %v4535_v58, %v810_v47  ;;  %v844_v50 = vadd.f32 %v837_v48, %v4535_v58  ;;  %v865_v51 = vadd.f32 %v858_v49, %v4535_v58  ;;  %v886_v61 = vadd.f32 %v879_v52, %v4535_v58  ;;  %v4570_v47 = vld [vmem:[%s5029_s4 + $0x70] sm:$0xff] }
 0x16c   :  { %v836_v54 = vmax.f32 %v829_v35, 0.0  ;;  %v857_v62 = vmax.f32 %v850_v59, 0.0  ;;  %v878_v63 = vmax.f32 %v871_v39, 0.0  ;;  %v899_v55 = vmax.f32 %v892_v40, 0.0 }
 0x16d   :  { %v830_v0 = vmax.f32 %v823_v60, 0.0  ;;  %v851_v1 = vmax.f32 %v844_v50, 0.0  ;;  %v872_v41 = vmax.f32 %v865_v51, 0.0  ;;  %v893_v4 = vmax.f32 %v886_v61, 0.0 }
 0x16e   :  { %v4559_v14 = vmax.f32 %v836_v54, %v857_v62  ;;  %v4561_v18 = vmax.f32 %v878_v63, %v899_v55  ;;  %v824_v21 = vadd.f32 %v4535_v58, %v811_v53  ;;  %v845_v42 = vadd.f32 %v838_v32, %v4535_v58  ;;  %v4577_v53 = vld [vmem:[%s5029_s4 + $0x78] sm:$0xff]  ;;  %v4582_v32 = vld [vmem:[%s5029_s4 + $0x60] sm:$0xff] }
 0x16f   :  { %v900_v28 = vmax.f32 %v830_v0, %v851_v1  ;;  %v907_v43 = vmax.f32 %v872_v41, %v893_v4  ;;  %v866_v44 = vadd.f32 %v859_v29, %v4535_v58  ;;  %v887_v46 = vadd.f32 %v880_v31, %v4535_v58  ;;  %v4587_v29 = vld [vmem:[%s5029_s4 + $0x68] sm:$0xff] }
 0x170   :  { %v920_v48 = vmax.f32 %v4559_v14, %v4561_v18  ;;  %v831_v49 = vmax.f32 %v824_v21, 0.0  ;;  %v852_v52 = vmax.f32 %v845_v42, 0.0  ;;  %v825_v31 = vadd.f32 %v4535_v58, %v812_v34  ;;  %v2854_v14 = vld [vmem:[%s5031_s6 + $0x10] sm:$0xff]  ;;  %v2855_v18 = vld [vmem:[%s5031_s6 + $0x18] sm:$0xff] }
 0x171   :  { %v914_v35 = vmax.f32 %v900_v28, %v907_v43  ;;  %v873_v59 = vmax.f32 %v866_v44, 0.0  ;;  %v894_v39 = vmax.f32 %v887_v46, 0.0  ;;  %v846_v40 = vadd.f32 %v839_v33, %v4535_v58 }
 0x172   :  { %v901_v60 = vmax.f32 %v831_v49, %v852_v52  ;;  %v832_v50 = vmax.f32 %v825_v31, 0.0  ;;  %v860_v51 = vmul.f32 %v4511_v22, %v4393_v9  ;;  %v881_v61 = vmul.f32 %v4511_v22, %v4395_v10  ;;  %v4608_v9 = vld [vmem:[%s5029_s4 + $0x90] sm:$0xff]  ;;  %v4613_v10 = vld [vmem:[%s5029_s4 + $0x98] sm:$0xff] }
 0x173   :  { %3339 = vmatmul.mubr.msk.f32.vlgmr.msra.gmra.mrb[28].mxu1 %vm603_vm3, %v914_v35  ;;  %v927_v54 = vrot.slane %v914_v35, 2  ;;  %v908_v62 = vmax.f32 %v873_v59, %v894_v39  ;;  %v3698_v34 = vpack.c.bf16 %v4577_v53, %v4570_v47  ;;  %v3695_v63 = vpack.c.bf16 %v4587_v29, %v4582_v32  ;;  %v3170_v32 = vld [vmem:[%s5029_s4 + $0xa0] sm:$0xff]  ;;  %v3171_v29 = vld [vmem:[%s5029_s4 + $0xa8] sm:$0xff] }
 0x174   :  { %3687 = vmatpush3.bf16.msra.mxu1 %v3686_v23  ;;  %3352 = vmatprep.mubr.msk.f32.mxu1 %vm3829_vm2, %v3828_v30  ;;  %v853_v33 = vmax.f32 %v846_v40, 0.0  ;;  %v867_v55 = vadd.f32 %v860_v51, %v4535_v58  ;;  %v888_v0 = vadd.f32 %v881_v61, %v4535_v58  ;;  %v813_v45 = vmul.f32 %v4511_v22, %v4305_v5 }
 0x175   :  { %3332 = vmatmul.mubr.msk.f32.vlgmr.msra.gmra.mrb[28].mxu0 %vm603_vm3, %v927_v54  ;;  %v1152_v2 = vrot.slane %v914_v35, 6  ;;  %3691 = vmatprep.subr.bf16.mxu1 %v3827_v3  ;;  %v4621_v23 = vmax.f32 %v901_v60, %v908_v62  ;;  %v840_v1 = vmul.f32 %v4511_v22, %v4307_v6  ;;  %v861_v41 = vmul.f32 %v4511_v22, %v4407_v25 }
 0x176   :  { %3684 = vmatpush3.bf16.msra.mxu0 %v3683_v24  ;;  %3345 = vmatprep.mubr.msk.f32.mxu0 %vm3829_vm2, %v3828_v30  ;;  %v874_v5 = vmax.f32 %v867_v55, 0.0  ;;  %v895_v4 = vmax.f32 %v888_v0, 0.0  ;;  %v902_v21 = vmax.f32 %v832_v50, %v853_v33  ;;  %v826_v42 = vadd.f32 %v4535_v58, %v813_v45  ;;  %v3180_v0 = vld [vmem:[%s5029_s4 + $0xd8] sm:$0xff] }
 0x177   :  { %3353 = vmatmul.mubr.msk.f32.vlgmr.msra.gmra.mrb[30].mxu1 %vm603_vm3, %v1152_v2  ;;  %v1075_v28 = vrot.slane %v914_v35, 4  ;;  %3688 = vmatprep.subr.bf16.mxu0 %v3827_v3  ;;  %v1306_v6 = vrot.slane %v4621_v23, 2  ;;  %v3704_v25 = vpack.c.bf16 %v4613_v10, %v4608_v9  ;;  %v847_v7 = vadd.f32 %v840_v1, %v4535_v58 }
 0x178   :  { %3693 = vmatpush3.bf16.msra.mxu1 %v3692_v38  ;;  %3366 = vmatprep.mubr.msk.f32.mxu1 %vm3829_vm2, %v3828_v30  ;;  %v909_v24 = vmax.f32 %v874_v5, %v895_v4  ;;  %v833_v43 = vmax.f32 %v826_v42, 0.0  ;;  %v868_v44 = vadd.f32 %v861_v41, %v4535_v58  ;;  %v882_v46 = vmul.f32 %v4511_v22, %v4409_v26  ;;  %v4665_v38 = vld [vmem:[%s5029_s4 + $0xb8] sm:$0xff]  ;;  %v3176_v5 = vld [vmem:[%s5029_s4 + $0xc0] sm:$0xff]  ;;  %v3177_v4 = vld [vmem:[%s5029_s4 + $0xc8] sm:$0xff] }
 0x179   :  { %3346 = vmatmul.mubr.msk.f32.vlgmr.msra.gmra.mrb[30].mxu0 %vm603_vm3, %v1075_v28  ;;  %3697 = vmatprep.subr.bf16.mxu1 %v3827_v3  ;;  %v854_v47 = vmax.f32 %v847_v7, 0.0  ;;  %v814_v26 = vmul.f32 %v4511_v22, %v4319_v19  ;;  %v841_v49 = vmul.f32 %v4511_v22, %v4321_v20  ;;  %v862_v52 = vmul.f32 %v4511_v22, %v4421_v56 }
 0x17a   :  { %3690 = vmatpush3.bf16.msra.mxu0 %v3689_v27  ;;  %3359 = vmatprep.mubr.msk.f32.mxu0 %vm3829_vm2, %v3828_v30  ;;  %v4678_v53 = vmax.f32 %v902_v21, %v909_v24  ;;  %v875_v31 = vmax.f32 %v868_v44, 0.0  ;;  %v889_v35 = vadd.f32 %v882_v46, %v4535_v58  ;;  %v883_v19 = vmul.f32 %v4511_v22, %v4423_v57  ;;  %v3182_v44 = vld [vmem:[%s5029_s4 + $0xe0] sm:$0xff]  ;;  %v3183_v46 = vld [vmem:[%s5029_s4 + $0xe8] sm:$0xff] }
 0x17b   :  { %3367 = vmatmul.mubr.msk.f32.vlgmr.msra.gmra.mrb[32].mxu1 %vm603_vm3, %v1306_v6  ;;  %3694 = vmatprep.subr.bf16.mxu0 %v3827_v3  ;;  %v903_v20 = vmax.f32 %v833_v43, %v854_v47  ;;  %v827_v56 = vadd.f32 %v4535_v58, %v814_v26  ;;  %v848_v16 = vadd.f32 %v841_v49, %v4535_v58  ;;  %v1460_v17 = vrot.slane %v4621_v23, 6  ;;  %v3191_v47 = vld [vmem:[%s5029_s4 + $0x110] sm:$0xff]  ;;  %v3192_v26 = vld [vmem:[%s5029_s4 + $0x118] sm:$0xff] }
 0x17c   :  { %3699 = vmatpush3.bf16.msra.mxu1 %v3698_v34  ;;  %3380 = vmatprep.mubr.msk.f32.mxu1 %vm3829_vm2, %v3828_v30  ;;  %v3701_v27 = vpack.c.bf16 %v3165_v13, %v4647_v8  ;;  %v3710_v57 = vpack.c.bf16 %v4665_v38, %v4660_v15  ;;  %v896_v59 = vmax.f32 %v889_v35, 0.0  ;;  %v869_v60 = vadd.f32 %v862_v52, %v4535_v58 }
 0x17d   :  { %3360 = vmatmul.mubr.msk.f32.vlgmr.msra.gmra.mrb[32].mxu0 %vm603_vm3, %v4621_v23  ;;  %3703 = vmatprep.subr.bf16.mxu1 %v3827_v3  ;;  %v834_v39 = vmax.f32 %v827_v56, 0.0  ;;  %v855_v40 = vmax.f32 %v848_v16, 0.0  ;;  %v890_v50 = vadd.f32 %v883_v19, %v4535_v58  ;;  %v1383_v51 = vrot.slane %v4621_v23, 4  ;;  %v3198_v56 = vld [vmem:[%s5029_s4 + $0x138] sm:$0xff] }
 0x17e   :  { %3696 = vmatpush3.bf16.msra.mxu0 %v3695_v63  ;;  %3373 = vmatprep.mubr.msk.f32.mxu0 %vm3829_vm2, %v3828_v30  ;;  %v910_v61 = vmax.f32 %v875_v31, %v896_v59  ;;  %v815_v54 = vmul.f32 %v4511_v22, %v4333_v36  ;;  %v842_v62 = vmul.f32 %v4511_v22, %v4335_v37  ;;  %v876_v34 = vmax.f32 %v869_v60, 0.0  ;;  %v3189_v31 = vld [vmem:[%s5029_s4 + $0x108] sm:$0xff]  ;;  %v3204_v60 = vld [vmem:[%s5029_s4 + $0x158] sm:$0xff] }
 0x17f   :  { %3381 = vmatmul.mubr.msk.f32.vlgmr.msra.gmra.mrb[34].mxu1 %vm603_vm3, %v1460_v17  ;;  %3700 = vmatprep.subr.bf16.mxu0 %v3827_v3  ;;  %v897_v63 = vmax.f32 %v890_v50, 0.0  ;;  %v904_v9 = vmax.f32 %v834_v39, %v855_v40  ;;  %v863_v36 = vmul.f32 %v4511_v22, %v4435_v11  ;;  %v1614_v55 = vrot.slane %v4678_v53, 2  ;;  %v3179_v11 = vld [vmem:[%s5029_s4 + $0xd0] sm:$0xff] }
 0x180   :  { %3705 = vmatpush3.bf16.msra.mxu1 %v3704_v25  ;;  %3394 = vmatprep.mubr.msk.f32.mxu1 %vm3829_vm2, %v3828_v30  ;;  %v4720_v37 = vmax.f32 %v903_v20, %v910_v61  ;;  %v828_v10 = vadd.f32 %v4535_v58, %v815_v54  ;;  %v849_v33 = vadd.f32 %v842_v62, %v4535_v58  ;;  %v1768_v6 = vrot.slane %v4678_v53, 6  ;;  %v3185_v25 = vld [vmem:[%s5029_s4 + $0xf0] sm:$0xff]  ;;  %v3201_v61 = vld [vmem:[%s5029_s4 + $0x148] sm:$0xff] }
 0x181   :  { %3374 = vmatmul.mubr.msk.f32.vlgmr.msra.gmra.mrb[34].mxu0 %vm603_vm3, %v1383_v51  ;;  %3709 = vmatprep.subr.bf16.mxu1 %v3827_v3  ;;  %v911_v45 = vmax.f32 %v876_v34, %v897_v63  ;;  %v870_v2 = vadd.f32 %v863_v36, %v4535_v58  ;;  %v884_v23 = vmul.f32 %v4511_v22, %v4437_v12  ;;  %v1691_v43 = vrot.slane %v4678_v53, 4  ;;  %v3197_v20 = vld [vmem:[%s5029_s4 + $0x130] sm:$0xff]  ;;  %v3200_v51 = vld [vmem:[%s5029_s4 + $0x140] sm:$0xff]  ;;  %v3207_v36 = vld [vmem:[%s5029_s4 + $0x168] sm:$0xff] }
 0x182   :  { %3702 = vmatpush3.bf16.msra.mxu0 %v3701_v27  ;;  %3387 = vmatprep.mubr.msk.f32.mxu0 %vm3829_vm2, %v3828_v30  ;;  %v3707_v1 = vpack.c.bf16 %v3171_v29, %v3170_v32  ;;  %v835_v41 = vmax.f32 %v828_v10, 0.0  ;;  %v856_v12 = vmax.f32 %v849_v33, 0.0  ;;  %v3716_v28 = vpack.c.bf16 %v3180_v0, %v3179_v11  ;;  %v3194_v27 = vld [vmem:[%s5029_s4 + $0x120] sm:$0xff]  ;;  %v3203_v40 = vld [vmem:[%s5029_s4 + $0x150] sm:$0xff]  ;;  %v3210_v29 = vld [vmem:[%s5029_s4 + $0x178] sm:$0xff] }
 0x183   :  { %3395 = vmatmul.mubr.msk.f32.vlgmr.msra.gmra.mrb[36].mxu1 %vm603_vm3, %v1614_v55  ;;  %3706 = vmatprep.subr.bf16.mxu0 %v3827_v3  ;;  %v4746_v21 = vmax.f32 %v904_v9, %v911_v45  ;;  %v877_v22 = vmax.f32 %v870_v2, 0.0  ;;  %v891_v42 = vadd.f32 %v884_v23, %v4535_v58  ;;  %v3186_v58 = vld [vmem:[%s5029_s4 + $0xf8] sm:$0xff]  ;;  %v3713_v8 = vpack.c.bf16 %v3177_v4, %v3176_v5  ;;  %v3209_v32 = vld [vmem:[%s5029_s4 + $0x170] sm:$0xff]  ;;  %v3206_v9 = vld [vmem:[%s5029_s4 + $0x160] sm:$0xff] }
 0x184   :  { %3711 = vmatpush3.bf16.msra.mxu1 %v3710_v57  ;;  %3408 = vmatprep.mubr.msk.f32.mxu1 %vm3829_vm2, %v3828_v30  ;;  %v905_v24 = vmax.f32 %v835_v41, %v856_v12  ;;  %v3722_v15 = vpack.c.bf16 %v3186_v58, %v3185_v25  ;;  %v1922_v38 = vrot.slane %v4720_v37, 2  ;;  %v3719_v52 = vpack.c.bf16 %v3183_v46, %v3182_v44  ;;  %v3195_v57 = vld [vmem:[%s5029_s4 + $0x128] sm:$0xff]  ;;  %v3212_v55 = vld [vmem:[%s5029_s4 + $0x180] sm:$0xff]  ;;  %v2858_v12 = vld [vmem:[%s5031_s6 + $0x30] sm:$0xff] }
 0x185   :  { %3388 = vmatmul.mubr.msk.f32.vlgmr.msra.gmra.mrb[36].mxu0 %vm603_vm3, %v4678_v53  ;;  %3715 = vmatprep.subr.bf16.mxu1 %v3827_v3  ;;  %v898_v7 = vmax.f32 %v891_v42, 0.0  ;;  %v3188_v53 = vld [vmem:[%s5029_s4 + $0x100] sm:$0xff]  ;;  %v3728_v35 = vpack.c.bf16 %v3192_v26, %v3191_v47  ;;  %v2076_v19 = vrot.slane %v4720_v37, 6  ;;  %v1999_v17 = vrot.slane %v4720_v37, 4  ;;  %v3213_v11 = vld [vmem:[%s5029_s4 + $0x188] sm:$0xff]  ;;  %v2862_v58 = vld [vmem:[%s5031_s6 + $0x50] sm:$0xff] }
 0x186   :  { %3708 = vmatpush3.bf16.msra.mxu0 %v3707_v1  ;;  %3401 = vmatprep.mubr.msk.f32.mxu0 %vm3829_vm2, %v3828_v30  ;;  %v3725_v16 = vpack.c.bf16 %v3189_v31, %v3188_v53  ;;  %v3734_v59 = vpack.c.bf16 %v3198_v56, %v3197_v20  ;;  %v2230_v39 = vrot.slane %v4746_v21, 2  ;;  %v3731_v50 = vpack.c.bf16 %v3195_v57, %v3194_v27  ;;  %v2852_v23 = vld [vmem:[%s5031_s6] sm:$0xff]  ;;  %v2853_v1 = vld [vmem:[%s5031_s6 + $0x8] sm:$0xff]  ;;  %v2952_v47 = vld [vmem:[%s5033_s8 + $0x18] sm:$0xff] }
 0x187   :  { %3409 = vmatmul.mubr.msk.f32.vlgmr.msra.gmra.mrb[38].mxu1 %vm603_vm3, %v1768_v6  ;;  %3712 = vmatprep.subr.bf16.mxu0 %v3827_v3  ;;  %v912_v13 = vmax.f32 %v877_v22, %v898_v7  ;;  %v3740_v54 = vpack.c.bf16 %v3204_v60, %v3203_v40  ;;  %v2384_v62 = vrot.slane %v4746_v21, 6  ;;  %v3737_v34 = vpack.c.bf16 %v3201_v61, %v3200_v51  ;;  %v2856_v5 = vld [vmem:[%s5031_s6 + $0x20] sm:$0xff]  ;;  %v2857_v4 = vld [vmem:[%s5031_s6 + $0x28] sm:$0xff]  ;;  %v2859_v22 = vld [vmem:[%s5031_s6 + $0x38] sm:$0xff] }
 0x188   :  { %3717 = vmatpush3.bf16.msra.mxu1 %v3716_v28  ;;  %3422 = vmatprep.mubr.msk.f32.mxu1 %vm3829_vm2, %v3828_v30  ;;  %v2307_v63 = vrot.slane %v4746_v21, 4  ;;  %v3743_v33 = vpack.c.bf16 %v3207_v36, %v3206_v9  ;;  %v3749_v45 = vpack.c.bf16 %v3213_v11, %v3212_v55  ;;  %v3752_v41 = vpack.c.bf16 %v2853_v1, %v2852_v23  ;;  %v2860_v28 = vld [vmem:[%s5031_s6 + $0x40] sm:$0xff]  ;;  %v2861_v6 = vld [vmem:[%s5031_s6 + $0x48] sm:$0xff]  ;;  %v2863_v7 = vld [vmem:[%s5031_s6 + $0x58] sm:$0xff] }
 0x189   :  { %3402 = vmatmul.mubr.msk.f32.vlgmr.msra.gmra.mrb[38].mxu0 %vm603_vm3, %v1691_v43  ;;  %3721 = vmatprep.subr.bf16.mxu1 %v3827_v3  ;;  %v4783_v49 = vmax.f32 %v905_v24, %v912_v13  ;;  %v3761_v42 = vpack.c.bf16 %v2859_v22, %v2858_v12  ;;  %v3764_v25 = vpack.c.bf16 %v2861_v6, %v2860_v28  ;;  %v2864_v24 = vld [vmem:[%s5031_s6 + $0x60] sm:$0xff]  ;;  %v2865_v43 = vld [vmem:[%s5031_s6 + $0x68] sm:$0xff]  ;;  %v2866_v26 = vld [vmem:[%s5031_s6 + $0x70] sm:$0xff] }
 0x18a   :  { %3714 = vmatpush3.bf16.msra.mxu0 %v3713_v8  ;;  %3415 = vmatprep.mubr.msk.f32.mxu0 %vm3829_vm2, %v3828_v30  ;;  %v3767_v8 = vpack.c.bf16 %v2863_v7, %v2862_v58  ;;  %v3770_v44 = vpack.c.bf16 %v2865_v43, %v2864_v24  ;;  %v2949_v46 = vld [vmem:[%s5033_s8] sm:$0xff]  ;;  %v2950_v13 = vld [vmem:[%s5033_s8 + $0x8] sm:$0xff]  ;;  %v2959_v27 = vld [vmem:[%s5033_s8 + $0x50] sm:$0xff] }
 0x18b   :  { %3423 = vmatmul.mubr.msk.f32.vlgmr.msra.gmra.mrb[40].mxu1 %vm603_vm3, %v1922_v38  ;;  %3718 = vmatprep.subr.bf16.mxu0 %v3827_v3  ;;  %v2538_v10 = vrot.slane %v4783_v49, 2  ;;  %v2692_v0 = vrot.slane %v4783_v49, 6  ;;  %v2615_v2 = vrot.slane %v4783_v49, 4  ;;  %v3773_v38 = vpack.c.bf16 %v2950_v13, %v2949_v46  ;;  %v2954_v53 = vld [vmem:[%s5033_s8 + $0x28] sm:$0xff]  ;;  %v2957_v56 = vld [vmem:[%s5033_s8 + $0x40] sm:$0xff]  ;;  %v2960_v57 = vld [vmem:[%s5033_s8 + $0x58] sm:$0xff] }
 0x18c   :  { %3723 = vmatpush3.bf16.msra.mxu1 %v3722_v15  ;;  %3436 = vmatprep.mubr.msk.f32.mxu1 %vm3829_vm2, %v3828_v30  ;;  %v2951_v15 = vld [vmem:[%s5033_s8 + $0x10] sm:$0xff] }
 0x18d   :  { %3416 = vmatmul.mubr.msk.f32.vlgmr.msra.gmra.mrb[40].mxu0 %vm603_vm3, %v4720_v37  ;;  %3727 = vmatprep.subr.bf16.mxu1 %v3827_v3  ;;  %v3746_v37 = vpack.c.bf16 %v3210_v29, %v3209_v32 }
 0x18e   :  { %3720 = vmatpush3.bf16.msra.mxu0 %v3719_v52  ;;  %3429 = vmatprep.mubr.msk.f32.mxu0 %vm3829_vm2, %v3828_v30  ;;  %v2953_v52 = vld [vmem:[%s5033_s8 + $0x20] sm:$0xff] }
 0x18f   :  { %3437 = vmatmul.mubr.msk.f32.vlgmr.msra.gmra.mrb[42].mxu1 %vm603_vm3, %v2076_v19  ;;  %3724 = vmatprep.subr.bf16.mxu0 %v3827_v3  ;;  %v3779_v31 = vpack.c.bf16 %v2954_v53, %v2953_v52  ;;  %v2956_v19 = vld [vmem:[%s5033_s8 + $0x38] sm:$0xff] }
 0x190   :  { %3729 = vmatpush3.bf16.msra.mxu1 %v3728_v35  ;;  %3450 = vmatprep.mubr.msk.f32.mxu1 %vm3829_vm2, %v3828_v30  ;;  %v2955_v35 = vld [vmem:[%s5033_s8 + $0x30] sm:$0xff] }
 0x191   :  { %3430 = vmatmul.mubr.msk.f32.vlgmr.msra.gmra.mrb[42].mxu0 %vm603_vm3, %v1999_v17  ;;  %3733 = vmatprep.subr.bf16.mxu1 %v3827_v3  ;;  %v3782_v20 = vpack.c.bf16 %v2956_v19, %v2955_v35 }
 0x192   :  { %3726 = vmatpush3.bf16.msra.mxu0 %v3725_v16  ;;  %3443 = vmatprep.mubr.msk.f32.mxu0 %vm3829_vm2, %v3828_v30  ;;  %v2958_v16 = vld [vmem:[%s5033_s8 + $0x48] sm:$0xff] }
 0x193   :  { %3451 = vmatmul.mubr.msk.f32.vlgmr.msra.gmra.mrb[44].mxu1 %vm603_vm3, %v2230_v39  ;;  %3730 = vmatprep.subr.bf16.mxu0 %v3827_v3  ;;  %v3785_v17 = vpack.c.bf16 %v2958_v16, %v2957_v56 }
 0x194   :  { %3735 = vmatpush3.bf16.msra.mxu1 %v3734_v59  ;;  %3464 = vmatprep.mubr.msk.f32.mxu1 %vm3829_vm2, %v3828_v30  ;;  %v3788_v59 = vpack.c.bf16 %v2960_v57, %v2959_v27 }
 0x195   :  { %3444 = vmatmul.mubr.msk.f32.vlgmr.msra.gmra.mrb[44].mxu0 %vm603_vm3, %v4746_v21  ;;  %3739 = vmatprep.subr.bf16.mxu1 %v3827_v3  ;;  %v3758_v21 = vpack.c.bf16 %v2857_v4, %v2856_v5 }
 0x196   :  { %3732 = vmatpush3.bf16.msra.mxu0 %v3731_v50  ;;  %3457 = vmatprep.mubr.msk.f32.mxu0 %vm3829_vm2, %v3828_v30 }
 0x197   :  { %3465 = vmatmul.mubr.msk.f32.vlgmr.msra.gmra.mrb[46].mxu1 %vm603_vm3, %v2384_v62  ;;  %3736 = vmatprep.subr.bf16.mxu0 %v3827_v3 }
 0x198   :  { %3741 = vmatpush3.bf16.msra.mxu1 %v3740_v54  ;;  %3478 = vmatprep.mubr.msk.f32.mxu1 %vm3829_vm2, %v3828_v30 }
 0x199   :  { %3458 = vmatmul.mubr.msk.f32.vlgmr.msra.gmra.mrb[46].mxu0 %vm603_vm3, %v2307_v63  ;;  %3745 = vmatprep.subr.bf16.mxu1 %v3827_v3 }
 0x19a   :  { %3738 = vmatpush3.bf16.msra.mxu0 %v3737_v34  ;;  %3471 = vmatprep.mubr.msk.f32.mxu0 %vm3829_vm2, %v3828_v30 }
 0x19b   :  { %3479 = vmatmul.mubr.msk.f32.vlgmr.msra.gmra.mrb[48].mxu1 %vm603_vm3, %v2538_v10  ;;  %3742 = vmatprep.subr.bf16.mxu0 %v3827_v3 }
 0x19c   :  { %3747 = vmatpush3.bf16.msra.mxu1 %v3746_v37  ;;  %3492 = vmatprep.mubr.msk.f32.mxu1 %vm3829_vm2, %v3828_v30 }
 0x19d   :  { %3472 = vmatmul.mubr.msk.f32.vlgmr.msra.gmra.mrb[48].mxu0 %vm603_vm3, %v4783_v49  ;;  %3751 = vmatprep.subr.bf16.mxu1 %v3827_v3  ;;  %v3776_v49 = vpack.c.bf16 %v2952_v47, %v2951_v15 }
 0x19e   :  { %3744 = vmatpush3.bf16.msra.mxu0 %v3743_v33  ;;  %3485 = vmatprep.mubr.msk.f32.mxu0 %vm3829_vm2, %v3828_v30 }
 0x19f   :  { %3493 = vmatmul.mubr.msk.f32.vlgmr.msra.gmra.mrb[50].mxu1 %vm603_vm3, %v2692_v0  ;;  %3748 = vmatprep.subr.bf16.mxu0 %v3827_v3 }
 0x1a0   :  { %3532 = vmatprep.mubr.msk.f32.mxu1 %vm3829_vm2, %v3828_v30  ;;  %3753 = vmatpush3.bf16.msra.mxu1 %v3752_v41 }
 0x1a1   :  { %3486 = vmatmul.mubr.msk.f32.vlgmr.msra.gmra.mrb[50].mxu0 %vm603_vm3, %v2615_v2  ;;  %3754 = vmatprep.subr.bf16.mxu1 %v3827_v3 }
 0x1a2   :  { %3750 = vmatpush3.bf16.msra.mxu0 %v3749_v45  ;;  %3499 = vmatprep.mubr.msk.f32.mxu0 %vm3829_vm2, %v3828_v30 }
 0x1a3   :  { %3772 = vmatprep.subr.bf16.mxu0 %v3827_v3 }
 0x1a5   :  { %3500 = vmatmul.mubr.msk.f32.vlgmr.msra.gmra.mrb[52].mxu0 %vm603_vm3, %v920_v48  ;;  %v3755_v48 = vpack.c.bf16 %v2855_v18, %v2854_v14 }
 0x1a6   :  { %3565 = vmatprep.mubr.msk.f32.mxu0 %vm3829_vm2, %v3828_v30  ;;  %3774 = vmatpush3.bf16.msra.mxu0 %v3773_v38 }
 0x1a7   :  { %3756 = vmatpush3.bf16.msra.mxu1 %v3755_v48  ;;  %3775 = vmatprep.subr.bf16.mxu0 %v3827_v3 }
 0x1a8   :  { %3757 = vmatprep.subr.bf16.mxu1 %v3827_v3 }
 0x1aa   :  { %3777 = vmatpush3.bf16.msra.mxu0 %v3776_v49 }
 0x1ab   :  { %3759 = vmatpush3.bf16.msra.mxu1 %v3758_v21  ;;  %3778 = vmatprep.subr.bf16.mxu0 %v3827_v3 }
 0x1ac   :  { %3760 = vmatprep.subr.bf16.mxu1 %v3827_v3 }
 0x1ae   :  { %3780 = vmatpush3.bf16.msra.mxu0 %v3779_v31 }
 0x1af   :  { %3762 = vmatpush3.bf16.msra.mxu1 %v3761_v42  ;;  %3781 = vmatprep.subr.bf16.mxu0 %v3827_v3 }
 0x1b0   :  { %3763 = vmatprep.subr.bf16.mxu1 %v3827_v3 }
 0x1b2   :  { %3783 = vmatpush3.bf16.msra.mxu0 %v3782_v20 }
 0x1b3   :  { %3765 = vmatpush3.bf16.msra.mxu1 %v3764_v25  ;;  %3784 = vmatprep.subr.bf16.mxu0 %v3827_v3 }
 0x1b4   :  { %3766 = vmatprep.subr.bf16.mxu1 %v3827_v3 }
 0x1b6   :  { %3786 = vmatpush3.bf16.msra.mxu0 %v3785_v17 }
 0x1b7   :  { %3768 = vmatpush3.bf16.msra.mxu1 %v3767_v8  ;;  %3787 = vmatprep.subr.bf16.mxu0 %v3827_v3 }
 0x1b8   :  { %3769 = vmatprep.subr.bf16.mxu1 %v3827_v3 }
 0x1ba   :  { %3789 = vmatpush3.bf16.msra.mxu0 %v3788_v59 }
 0x1bb   :  { %3771 = vmatpush3.bf16.msra.mxu1 %v3770_v44  ;;  %3790 = vmatprep.subr.bf16.mxu0 %v3827_v3 }
 0x1bc   :  { %3530 = vmatprep.subr.mxu1 %v3828_v30 }
 0x1bf   :  { %3531 = vmatpush3.msra.mxu1 %v2866_v26 }
 0x246   :  { %v1068_v39 = vpop.f32.mrb[28].mxu1 }
 0x247   :  { %v3340_v40 = vpop.f32.mrb[29].mxu1 }
 0x248   :  { %v996_v60 = vpop.f32.mrb[28].mxu0 }
 0x249   :  { %v1069_v50 = vadd.f32 %v1068_v39, %v996_v60  ;;  %v3333_v51 = vpop.f32.mrb[29].mxu0 }
 0x24a   :  { %v1221_v61 = vpop.f32.mrb[30].mxu1 }
 0x24b   :  { %v3354_v54 = vpop.f32.mrb[31].mxu1 }
 0x24c   :  { %v1144_v62 = vpop.f32.mrb[30].mxu0 }
 0x24d   :  { %v1148_v32 = vadd.f32 %v1144_v62, %v1069_v50  ;;  %v3347_v29 = vpop.f32.mrb[31].mxu0 }
 0x24e   :  { %v1375_v34 = vpop.f32.mrb[32].mxu1  ;;  %v3215_v29 = vld [vmem:[%s5030_s5] ss:$0 sm:$0xff] }
 0x24f   :  { %v3368_v63 = vpop.f32.mrb[33].mxu1  ;;  %v1225_v9 = vadd.f32 %v1221_v61, %v1148_v32 }
 0x250   :  { %v1298_v36 = vpop.f32.mrb[32].mxu0 }
 0x251   :  { %v1302_v37 = vadd.f32 %v1298_v36, %v1225_v9  ;;  %v3361_v10 = vpop.f32.mrb[33].mxu0 }
 0x252   :  { %v1529_v33 = vpop.f32.mrb[34].mxu1  ;;  %v2962_v10 = vld [vmem:[%s5033_s8 + $0x68] sm:$0xff] }
 0x253   :  { %v3382_v55 = vpop.f32.mrb[35].mxu1  ;;  %v1379_v11 = vadd.f32 %v1375_v34, %v1302_v37  ;;  %v2961_v37 = vld [vmem:[%s5033_s8 + $0x60] sm:$0xff] }
 0x254   :  { %v1452_v3 = vpop.f32.mrb[34].mxu0  ;;  %v2963_v55 = vld [vmem:[%s5033_s8 + $0x70] sm:$0xff] }
 0x255   :  { %v1456_v0 = vadd.f32 %v1452_v3, %v1379_v11  ;;  %v3375_v45 = vpop.f32.mrb[35].mxu0  ;;  %v3216_v11 = vld [vmem:[%s5032_s7] ss:$0 sm:$0xff]  ;;  %s3830_s7 = smov [#allocation2]  }
 0x256   :  { %v1683_v2 = vpop.f32.mrb[36].mxu1  ;;  %s3060_s8 = sshll.u32 %s3830_s7, 4  ;;  %s3061_s8 = int_to_ptr.vmem [resolvable:$true] %s3060_s8 }
 0x257   :  { %v3396_v23 = vpop.f32.mrb[37].mxu1  ;;  %v1533_v1 = vadd.f32 %v1529_v33, %v1456_v0  ;;  %v3791_v33 = vpack.c.bf16 %v2962_v10, %v2961_v37  ;;  %s3803_s16 = scalar_lea.vmem %s3061_s8, 32  ;;  %p3808_p1 = scmp.lt.s32.totalorder %s3061_s8, %s3061_s8 }
 0x258   :  { %v1606_v41 = vpop.f32.mrb[36].mxu0  ;;  %v3218_v23 = vld [vmem:[%s5034_s9] ss:$0 sm:$0xff]  ;;  %p3804_p0 = scmp.ne.s32.totalorder %s3061_s8, %s3803_s16  ;;  %p3809_p2 = scmp.lt.s32.totalorder %s3803_s16, %s3803_s16 }
 0x259   :  { %v1610_v14 = vadd.f32 %v1606_v41, %v1533_v1  ;;  %v3389_v18 = vpop.f32.mrb[37].mxu0  ;;  %3792 = vmatpush3.bf16.msra.mxu0 %v3791_v33 }
 0x25a   :  { %v1837_v48 = vpop.f32.mrb[38].mxu1  ;;  %3563 = vmatprep.subr.mxu0 %v3828_v30  ;;  %p3810_p3 = por %p3809_p2, %p3808_p1 }
 0x25b   :  { %v3410_v5 = vpop.f32.mrb[39].mxu1  ;;  %v1687_v4 = vadd.f32 %v1683_v2, %v1610_v14 }
 0x25c   :  { %v1760_v21 = vpop.f32.mrb[38].mxu0  ;;  %p3811_p4 = pnand %p3810_p3, %p3804_p0 }
 0x25d   :  { %v1764_v12 = vadd.f32 %v1760_v21, %v1687_v4  ;;  %v3403_v22 = vpop.f32.mrb[39].mxu0  ;;  %3564 = vmatpush3.msra.mxu0 %v2963_v55 }
 0x25e   :  { %v1991_v42 = vpop.f32.mrb[40].mxu1 }
 0x25f   :  { %v3424_v28 = vpop.f32.mrb[41].mxu1  ;;  %v1841_v6 = vadd.f32 %v1837_v48, %v1764_v12 }
 0x260   :  { %v1914_v25 = vpop.f32.mrb[40].mxu0 }
 0x261   :  { %v1918_v58 = vadd.f32 %v1914_v25, %v1841_v6  ;;  %v3417_v7 = vpop.f32.mrb[41].mxu0 }
 0x262   :  { %v2145_v8 = vpop.f32.mrb[42].mxu1 }
 0x263   :  { %v3438_v24 = vpop.f32.mrb[43].mxu1  ;;  %v1995_v43 = vadd.f32 %v1991_v42, %v1918_v58 }
 0x264   :  { %v2068_v44 = vpop.f32.mrb[42].mxu0 }
 0x265   :  { %v2072_v46 = vadd.f32 %v2068_v44, %v1995_v43  ;;  %v3431_v13 = vpop.f32.mrb[43].mxu0 }
 0x266   :  { %v2299_v15 = vpop.f32.mrb[44].mxu1 }
 0x267   :  { %v3452_v38 = vpop.f32.mrb[45].mxu1  ;;  %v2149_v47 = vadd.f32 %v2145_v8, %v2072_v46 }
 0x268   :  { %v2222_v26 = vpop.f32.mrb[44].mxu0 }
 0x269   :  { %v2226_v49 = vadd.f32 %v2222_v26, %v2149_v47  ;;  %v3445_v52 = vpop.f32.mrb[45].mxu0 }
 0x26a   :  { %v2453_v53 = vpop.f32.mrb[46].mxu1 }
 0x26b   :  { %v3466_v31 = vpop.f32.mrb[47].mxu1  ;;  %v2303_v35 = vadd.f32 %v2299_v15, %v2226_v49 }
 0x26c   :  { %v2376_v19 = vpop.f32.mrb[46].mxu0 }
 0x26d   :  { %v2380_v20 = vadd.f32 %v2376_v19, %v2303_v35  ;;  %v3459_v56 = vpop.f32.mrb[47].mxu0 }
 0x26e   :  { %v2607_v16 = vpop.f32.mrb[48].mxu1 }
 0x26f   :  { %v3480_v17 = vpop.f32.mrb[49].mxu1  ;;  %v2457_v27 = vadd.f32 %v2453_v53, %v2380_v20 }
 0x270   :  { %v2530_v57 = vpop.f32.mrb[48].mxu0 }
 0x271   :  { %v2534_v59 = vadd.f32 %v2530_v57, %v2457_v27  ;;  %v3473_v39 = vpop.f32.mrb[49].mxu0 }
 0x272   :  { %v2761_v40 = vpop.f32.mrb[50].mxu1 }
 0x273   :  { %v3494_v60 = vpop.f32.mrb[51].mxu1  ;;  %v2611_v50 = vadd.f32 %v2607_v16, %v2534_v59 }
 0x274   :  { %v2684_v51 = vpop.f32.mrb[50].mxu0 }
 0x275   :  { %v2688_v61 = vadd.f32 %v2684_v51, %v2611_v50  ;;  %v3487_v54 = vpop.f32.mrb[51].mxu0 }
 0x277   :  { %v2765_v62 = vadd.f32 %v2761_v40, %v2688_v61 }
 0x278   :  { %v2838_v32 = vpop.f32.mrb[52].mxu0 }
 0x279   :  { %v2842_v34 = vadd.f32 %v2838_v32, %v2765_v62  ;;  %v3501_v63 = vpop.f32.mrb[53].mxu0 }
 0x27b   :  { %v2850_v9 = vadd.f32 %v3215_v29, %v2842_v34 }
 0x27d   :  { %v2851_v36 = vmax.f32 %v2850_v9, 0.0 }
 0x27f   :  { %3533 = vmatmul.mubr.msk.f32.vlgmr.msra.gmra.mrb[52].mxu1 %vm2874_vm5, %v2851_v36 }
 0x352   :  { %v2944_v3 = vpop.f32.mrb[52].mxu1 }
 0x353   :  { %v2945_v0 = vadd.f32 %v3216_v11, %v2944_v3  ;;  %v3534_v45 = vpop.f32.mrb[53].mxu1 }
 0x355   :  { %v2948_v2 = vmax.f32 %v2945_v0, 0.0 }
 0x357   :  { %3566 = vmatmul.mubr.msk.f32.vlgmr.msra.gmra.mrb[54].mxu0 %vm2874_vm5, %v2948_v2 }
 0x42a   :  { %v3040_v1 = vpop.f32.mrb[54].mxu0 }
 0x42b   :  { %v3041_v30 = vadd.f32 %v3218_v23, %v3040_v1  ;;  %v3567_v41 = vpop.f32.mrb[55].mxu0 }
 0x42d   :  { %3799 = vtanh.f32 %v3041_v30 }
 0x437   :  { %v3800_v14 = vpop.eup %3799 }
 0x438   :  { %v3045_v18 = vmul.f32 %v3800_v14, %v3800_v14 }
 0x43a   :  { %v3047_v48 = vsel %vm3046_vm6, %v3045_v18, 0.0 }
 0x43b   :  { %3048 = vadd.xlane.f32.xlu0 %v3047_v48 }
 0x4c8   :  { %v3049_v5 = vpop.xlane.xlu0 %3048 }
 0x4c9   :  { %v3050_v4 = vmax.f32 %v3049_v5, 1e-24 }
 0x4cb   :  { %3801 = vrsqrt.f32 %v3050_v4 }
 0x4d5   :  { %v3802_v21 = vpop.eup %3801 }
 0x4d6   :  { %v3052_v12 = vmul.f32 %v3802_v21, %v3800_v14 }
 0x4d8   :  { %3053 = vst.msk [vmem:[#allocation2] sm:$0x3] %vm3046_vm6, %v3052_v12 }
 0x4d9   :  { %3814 = shalt.err (!%p3811_p4)
}
 0x4da   :  { %s3815_s18 = scalar_lea.hbm %s5035_s10, 32 }
 0x4db   :  { %p3816_p5 = scmp.ne.s32.totalorder %s5035_s10, %s3815_s18  ;;  %p3819_p6 = scmp.lt.u32.totalorder %s3815_s18, %s5035_s10 }
 0x4dd   :  { %p3821_p7 = pnand %p3819_p6, %p3816_p5 }
 0x4df   :  { %3824 = shalt.err (!%p3821_p7)
}
 0x4e0   :  { %3063 = dma.vmem_to_hbm [thread:$0]  %s3061_s8, 32, %s5035_s10, [#allocation3]  }
 0x4e1   :  { %3825 = dma.done.wait [#allocation3], 32  }
 0x4e2   :  { %3826 = vsyncadd [#allocation3], 4294967264 }
 0x4e3   :  { %3067 = vsyncpa [#allocation3], 1 }

</bundles_post_ra>
